<compile_context>
chip_gen: v7x
topology: tpu7x:2x2x1
jax: 0.10.0
libtpu: 0.0.40
codegen_flags: <defaults>
</compile_context>

<pallas_src>
import jax
import jax.numpy as jnp
from jax import lax
from jax.experimental import pallas as pl
from jax.experimental.pallas import tpu as pltpu

# ----- small, module-consistent sizes (bert-base => CHANNELS = 12 + 1) -----
B = 2             # batch
QLEN = 8          # input query token length
DLEN = 16         # input doc token length
BERT_SIZE = 128   # stand-in for 768 (kept a multiple of 128 for lane density)
CHANNELS = 13     # 12 + 1
DIM = 128         # ColBERT dim (module default 128 -> lane-dense outputs)
HSIZE = 256       # rep_l1 hidden (module default 256)
HLEN = 10         # number of theta rows (module default 10)
OUT = BERT_SIZE * (CHANNELS - 1) * 2  # rep_l2 output features (3072)

LQ = QLEN + 1     # BERT query seq len ([CLS] + query)           = 9
LD = DLEN + 2     # BERT doc seq len   ([CLS] + doc + SEP slot)  = 18
LQ_PAD = 16       # sublane-aligned query block
LD_PAD = 24       # sublane-aligned doc block
LTOT_PAD = LQ_PAD + LD_PAD   # rows per batch element in the padded layout (40)
ROWS = B * LTOT_PAD          # total projection rows (80)

EPS = 1e-12       # F.normalize default eps
LANES = 128       # lane width of the score output slab
NEG_INF = -1e30   # excludes artificial pad doc columns from the max


def _vmem():
    return pl.BlockSpec(memory_space=pltpu.MemorySpace.VMEM)


# --------------------------------------------------------------------------
# Single fused kernel:
#   theta_mid = rep_l2(relu(rep_l1(rep_theta)))
#   simmat    = L2norm(mask * (hidden @ clinear))      (q rows mask == 1)
#   score[b]  = sum_i max_j (q_rep[b,i] . d_rep[b,j])
# --------------------------------------------------------------------------
def fused_kernel(theta_ref, w1_ref, b1_ref, w2_ref, b2_ref,
                 hidden_ref, clinear_ref, mask_ref,
                 theta_out_ref, simmat_ref, score_ref):
    # --- theta MLP (bf16 MXU inputs, f32 accumulation) ---
    h = jnp.dot(theta_ref[...], w1_ref[...],
                preferred_element_type=jnp.float32) + b1_ref[...]
    h = jnp.maximum(h, 0.0)                                        # ReLU
    theta_out_ref[...] = jnp.dot(h.astype(jnp.bfloat16), w2_ref[...],
                                 preferred_element_type=jnp.float32) + b2_ref[...]

    # --- ColBERT projection: one sublane-filling 2-D matmul over all q+d rows ---
    # hidden_ref / clinear_ref arrive bf16 from the wrapper (no in-kernel cast).
    proj = jnp.dot(hidden_ref[...], clinear_ref[...],
                   preferred_element_type=jnp.float32)             # (ROWS, DIM) f32
    proj = proj * mask_ref[...]                                    # (ROWS, 1) mask

    # --- L2 normalize: x * rsqrt(max(sum x^2, eps^2)) == x / max(||x||, eps) ---
    sumsq = jnp.sum(proj * proj, axis=1, keepdims=True)            # (ROWS, 1)
    normed = proj * lax.rsqrt(jnp.maximum(sumsq, EPS * EPS))
    simmat_ref[...] = normed    # store drains in background; score uses the live value

    # --- MaxSim score from the in-register `normed` (no simmat_ref readback) ---
    # Artificial pad doc columns are excluded from the max; real masked doc rows
    # stay zero vectors (floor the max at 0) exactly like the PyTorch module.
    col_valid = lax.broadcasted_iota(jnp.int32, (LQ_PAD, LD_PAD), 1) < LD  # hoisted

    for b in range(B):  # static unroll, B tiny
        q_b = normed[b * LTOT_PAD: b * LTOT_PAD + LQ_PAD, :]            # (16, 128) f32
        d_b = normed[b * LTOT_PAD + LQ_PAD: (b + 1) * LTOT_PAD, :]      # (24, 128) f32
        d_bT = d_b.T                                                    # (128, 24) explicit transpose (XLU)
        s_b = jnp.dot(q_b, d_bT, preferred_element_type=jnp.float32)    # (16, 24) MXU-native
        s_b = jnp.where(col_valid, s_b, NEG_INF)
        m_b = jnp.max(s_b, axis=1, keepdims=True)                       # (16, 1); pad q rows give 0
        sc = jnp.sum(m_b, axis=0, keepdims=True)                        # (1, 1)
        score_ref[b:b + 1, :] = jnp.broadcast_to(sc, (1, LANES))        # lane-dense row write


def fused_forward(theta_bf16, w1, b1, w2, b2, hidden2d, clinear, mask2d):
    return pl.pallas_call(
        fused_kernel,
        out_shape=(
            jax.ShapeDtypeStruct((HLEN, OUT), jnp.float32),   # theta_mid
            jax.ShapeDtypeStruct((ROWS, DIM), jnp.float32),   # simmat (padded rows)
            jax.ShapeDtypeStruct((B, LANES), jnp.float32),    # score slab
        ),
        in_specs=[_vmem()] * 8,
        out_specs=(_vmem(), _vmem(), _vmem()),
        compiler_params=pltpu.CompilerParams(vmem_limit_bytes=32 * 1024 * 1024),
    )(theta_bf16, w1, b1, w2, b2, hidden2d, clinear, mask2d)


# --------------------------------------------------------------------------
# Full forward (token framing / mask precompute in plain JAX, compute in Pallas)
# --------------------------------------------------------------------------
def p0_colbert_forward(params, query_tok, query_mask, doc_tok, doc_mask,
                       q_hidden_last, d_hidden_last):
    batch, q_len = query_tok.shape
    d_len = doc_tok.shape[1]
    one_tok = jnp.ones((batch, 1), jnp.int32)
    Q_tok = jnp.full((batch, 1), 1, jnp.int32)
    D_tok = jnp.full((batch, 1), 2, jnp.int32)

    query_tok = jnp.concatenate([Q_tok, query_tok[:, :q_len - 1]], axis=1)
    doc_tok = jnp.concatenate([D_tok, doc_tok[:, :d_len - 1]], axis=1)
    query_mask = jnp.concatenate([one_tok, query_mask[:, :q_len - 1]], axis=1)
    doc_mask = jnp.concatenate([one_tok, doc_mask[:, :d_len - 1]], axis=1)

    # encode_colbert doc framing: pad with a SEP slot, place SEP, prepend CLS mask.
    # TODO(synk): SEP token lives at the fixed last column of cut_doc_tok while the
    # mask marks position doc_lengths — matches the reference only for full-length docs.
    doc_mask_p = jnp.concatenate(
        [doc_mask[:, :510], jnp.zeros((batch, 1), doc_mask.dtype)], axis=1)
    doc_lengths = jnp.minimum(jnp.sum(doc_mask > 0, axis=1), 510)
    doc_mask_p = doc_mask_p.at[jnp.arange(batch), doc_lengths].set(1)
    d_mask_enc = jnp.concatenate([one_tok, doc_mask_p], axis=1).astype(jnp.float32)
    cut_doc_tok = jnp.concatenate([one_tok, doc_tok[:, :510], one_tok], axis=1)

    # punctuation / pad mask, precomputed once as a single f32 tensor.
    t = cut_doc_tok
    punct = (((t >= 999) & (t <= 1013)) | ((t >= 1024) & (t <= 1036))
             | ((t >= 1063) & (t <= 1066)) | (t == -1))
    doc_row_mask = jnp.where(punct, 0.0, d_mask_enc)                       # (B, LD)

    # Row mask over the padded per-batch layout: [LQ real q | pad][LD real d | pad]
    q_rows = jnp.concatenate(
        [jnp.ones((batch, LQ), jnp.float32),
         jnp.zeros((batch, LQ_PAD - LQ), jnp.float32)], axis=1)
    d_rows = jnp.concatenate(
        [doc_row_mask, jnp.zeros((batch, LD_PAD - LD), jnp.float32)], axis=1)
    mask2d = jnp.concatenate([q_rows, d_rows], axis=1).reshape(batch * LTOT_PAD, 1)

    # TODO(synk): BERT encoder with prompt_hidden_states=theta not reimplemented;
    # q_hidden_last / d_hidden_last stand in for q_reps[-1] / d_reps[-1].
    q_h = jnp.pad(q_hidden_last, ((0, 0), (0, LQ_PAD - LQ), (0, 0)))
    d_h = jnp.pad(d_hidden_last, ((0, 0), (0, LD_PAD - LD), (0, 0)))
    hidden2d = jnp.concatenate([q_h, d_h], axis=1).reshape(
        batch * LTOT_PAD, BERT_SIZE).astype(jnp.bfloat16)                  # bf16 into kernel

    theta_mid, simmat2d, score_slab = fused_forward(
        params['rep_theta'].astype(jnp.bfloat16),
        params['w1'], params['b1'], params['w2'], params['b2'],
        hidden2d, params['clinear'], mask2d)

    theta = theta_mid.reshape(HLEN * 2, -1, BERT_SIZE).transpose(1, 0, 2)
    sim3 = simmat2d.reshape(batch, LTOT_PAD, DIM)
    simmat = jnp.concatenate([sim3[:, :LQ], sim3[:, LQ_PAD:LQ_PAD + LD]], axis=1)
    score = score_slab[:, :1]                      # (B, 1)
    return score, simmat, theta


if __name__ == "__main__":
    key = jax.random.PRNGKey(0)
    ks = jax.random.split(key, 10)

    # deterministic parameter init (synthetic; shapes follow P0ColBertRanker.__init__).
    # MXU weights stored bf16 (halved DMA bytes, f32 accumulation in-kernel);
    # biases and theta stay f32 (theta is cast to bf16 wrapper-side).
    params = {
        'rep_theta': 0.02 * jax.random.normal(ks[0], (HLEN, BERT_SIZE), jnp.float32),
        'w1': (0.05 * jax.random.normal(ks[1], (BERT_SIZE, HSIZE),
                                        jnp.float32)).astype(jnp.bfloat16),
        'b1': jnp.zeros((1, HSIZE), jnp.float32),
        'w2': (0.05 * jax.random.normal(ks[2], (HSIZE, OUT),
                                        jnp.float32)).astype(jnp.bfloat16),
        'b2': jnp.zeros((1, OUT), jnp.float32),
        'clinear': (0.05 * jax.random.normal(ks[3], (BERT_SIZE, DIM),
                                             jnp.float32)).astype(jnp.bfloat16),
    }

    # deterministic example inputs
    query_tok = jax.random.randint(ks[4], (B, QLEN), 0, 2000, jnp.int32)
    query_mask = jnp.ones((B, QLEN), jnp.int32)
    doc_tok = jax.random.randint(ks[5], (B, DLEN), 0, 2000, jnp.int32)
    doc_mask = jnp.ones((B, DLEN), jnp.int32)
    # synthetic BERT last-layer hidden states (stand-in for q_reps[-1] / d_reps[-1])
    q_hidden_last = jax.random.normal(ks[6], (B, LQ, BERT_SIZE), jnp.float32)
    d_hidden_last = jax.random.normal(ks[7], (B, LD, BERT_SIZE), jnp.float32)

    fwd = jax.jit(p0_colbert_forward)
    score, simmat, theta = fwd(params, query_tok, query_mask, doc_tok, doc_mask,
                               q_hidden_last, d_hidden_last)
    jax.block_until_ready((score, simmat, theta))

    assert score.shape == (B, 1)
    assert simmat.shape == (B, LQ + LD, DIM)
    assert theta.shape == (CHANNELS - 1, HLEN * 2, BERT_SIZE)
    assert bool(jnp.all(jnp.isfinite(score)))
    assert bool(jnp.all(jnp.isfinite(simmat)))
    print("KERNEL_OK")
</pallas_src>

<mosaic_0001>
module attributes {stable_mosaic.version = 11 : i64} {
  func.func @fused_kernel(%arg0: memref<10x128xbf16, #tpu.memory_space<vmem>>, %arg1: memref<128x256xbf16, #tpu.memory_space<vmem>>, %arg2: memref<1x256xf32, #tpu.memory_space<vmem>>, %arg3: memref<256x3072xbf16, #tpu.memory_space<vmem>>, %arg4: memref<1x3072xf32, #tpu.memory_space<vmem>>, %arg5: memref<80x128xbf16, #tpu.memory_space<vmem>>, %arg6: memref<128x128xbf16, #tpu.memory_space<vmem>>, %arg7: memref<80x1xf32, #tpu.memory_space<vmem>>, %arg8: memref<10x3072xf32, #tpu.memory_space<vmem>>, %arg9: memref<80x128xf32, #tpu.memory_space<vmem>>, %arg10: memref<2x128xf32, #tpu.memory_space<vmem>>) attributes {dimension_semantics = [], scalar_prefetch = 0 : i64, scratch_operands = 0 : i64, tpu.core_type = #tpu.core_type<tc>} {
    %c0 = arith.constant 0 : index
    %c0_0 = arith.constant 0 : index
    %0 = vector.load %arg0[%c0, %c0_0] : memref<10x128xbf16, #tpu.memory_space<vmem>>, vector<10x128xbf16>
    %c0_1 = arith.constant 0 : index
    %c0_2 = arith.constant 0 : index
    %1 = vector.load %arg1[%c0_1, %c0_2] : memref<128x256xbf16, #tpu.memory_space<vmem>>, vector<128x256xbf16>
    %cst = arith.constant dense<0.000000e+00> : vector<10x256xf32>
    %2 = tpu.matmul %0, %1, %cst {dimension_numbers = #tpu.dot_dimension_numbers<[1], [0], [0], [1], [0, 0, 1, 1], [], []>} : vector<10x128xbf16>, vector<128x256xbf16>, vector<10x256xf32> -> vector<10x256xf32>
    %c0_3 = arith.constant 0 : index
    %c0_4 = arith.constant 0 : index
    %3 = vector.load %arg2[%c0_3, %c0_4] : memref<1x256xf32, #tpu.memory_space<vmem>>, vector<1x256xf32>
    %4 = vector.broadcast %3 : vector<1x256xf32> to vector<10x256xf32>
    %5 = arith.addf %2, %4 : vector<10x256xf32>
    %cst_5 = arith.constant 0.000000e+00 : f32
    %6 = vector.broadcast %cst_5 : f32 to vector<10x256xf32>
    %7 = arith.maximumf %5, %6 : vector<10x256xf32>
    %8 = arith.truncf %7 : vector<10x256xf32> to vector<10x256xbf16>
    %c0_6 = arith.constant 0 : index
    %c0_7 = arith.constant 0 : index
    %9 = vector.load %arg3[%c0_6, %c0_7] : memref<256x3072xbf16, #tpu.memory_space<vmem>>, vector<256x3072xbf16>
    %cst_8 = arith.constant dense<0.000000e+00> : vector<10x3072xf32>
    %10 = tpu.matmul %8, %9, %cst_8 {dimension_numbers = #tpu.dot_dimension_numbers<[1], [0], [0], [1], [0, 0, 1, 1], [], []>} : vector<10x256xbf16>, vector<256x3072xbf16>, vector<10x3072xf32> -> vector<10x3072xf32>
    %c0_9 = arith.constant 0 : index
    %c0_10 = arith.constant 0 : index
    %11 = vector.load %arg4[%c0_9, %c0_10] : memref<1x3072xf32, #tpu.memory_space<vmem>>, vector<1x3072xf32>
    %12 = vector.broadcast %11 : vector<1x3072xf32> to vector<10x3072xf32>
    %13 = arith.addf %10, %12 : vector<10x3072xf32>
    %c0_11 = arith.constant 0 : index
    %c0_12 = arith.constant 0 : index
    %14 = vector.load %arg8[%c0_11, %c0_12] : memref<10x3072xf32, #tpu.memory_space<vmem>>, vector<10x3072xf32>
    tpu.vector_store %arg8[%c0_11, %c0_12], %13 {strides = array<i32>} : memref<10x3072xf32, #tpu.memory_space<vmem>>, vector<10x3072xf32>,
    %c0_13 = arith.constant 0 : index
    %c0_14 = arith.constant 0 : index
    %15 = vector.load %arg5[%c0_13, %c0_14] : memref<80x128xbf16, #tpu.memory_space<vmem>>, vector<80x128xbf16>
    %c0_15 = arith.constant 0 : index
    %c0_16 = arith.constant 0 : index
    %16 = vector.load %arg6[%c0_15, %c0_16] : memref<128x128xbf16, #tpu.memory_space<vmem>>, vector<128x128xbf16>
    %cst_17 = arith.constant dense<0.000000e+00> : vector<80x128xf32>
    %17 = tpu.matmul %15, %16, %cst_17 {dimension_numbers = #tpu.dot_dimension_numbers<[1], [0], [0], [1], [0, 0, 1, 1], [], []>} : vector<80x128xbf16>, vector<128x128xbf16>, vector<80x128xf32> -> vector<80x128xf32>
    %c0_18 = arith.constant 0 : index
    %c0_19 = arith.constant 0 : index
    %18 = vector.load %arg7[%c0_18, %c0_19] : memref<80x1xf32, #tpu.memory_space<vmem>>, vector<80x1xf32>
    %19 = vector.broadcast %18 : vector<80x1xf32> to vector<80x128xf32>
    %20 = arith.mulf %17, %19 : vector<80x128xf32>
    %21 = arith.mulf %20, %20 : vector<80x128xf32>
    %cst_20 = arith.constant dense<0.000000e+00> : vector<80xf32>
    %22 = vector.multi_reduction <add>, %21, %cst_20 [1] : vector<80x128xf32> to vector<80xf32>
    %23 = vector.shape_cast %22 : vector<80xf32> to vector<80x1xf32>
    %cst_21 = arith.constant 1.000000e-24 : f32
    %24 = vector.broadcast %cst_21 : f32 to vector<80x1xf32>
    %25 = arith.maximumf %23, %24 : vector<80x1xf32>
    %26 = math.rsqrt %25 : vector<80x1xf32>
    %27 = vector.broadcast %26 : vector<80x1xf32> to vector<80x128xf32>
    %28 = arith.mulf %20, %27 : vector<80x128xf32>
    %c0_22 = arith.constant 0 : index
    %c0_23 = arith.constant 0 : index
    %29 = vector.load %arg9[%c0_22, %c0_23] : memref<80x128xf32, #tpu.memory_space<vmem>>, vector<80x128xf32>
    tpu.vector_store %arg9[%c0_22, %c0_23], %28 {strides = array<i32>} : memref<80x128xf32, #tpu.memory_space<vmem>>, vector<80x128xf32>,
    %30 = tpu.iota {dimensions = array<i32: 1>} : vector<16x24xi32>
    %c18_i32 = arith.constant 18 : i32
    %31 = vector.broadcast %c18_i32 : i32 to vector<16x24xi32>
    %32 = arith.cmpi slt, %30, %31 : vector<16x24xi32>
    %33 = vector.extract_strided_slice %28 {offsets = [0, 0], sizes = [16, 128], strides = [1, 1]} : vector<80x128xf32> to vector<16x128xf32>
    %34 = vector.extract_strided_slice %28 {offsets = [16, 0], sizes = [24, 128], strides = [1, 1]} : vector<80x128xf32> to vector<24x128xf32>
    %35 = tpu.transpose %34, [1, 0] : vector<24x128xf32> -> vector<128x24xf32>
    %cst_24 = arith.constant dense<0.000000e+00> : vector<16x24xf32>
    %36 = tpu.matmul %33, %35, %cst_24 {dimension_numbers = #tpu.dot_dimension_numbers<[1], [0], [0], [1], [0, 0, 1, 1], [], []>} : vector<16x128xf32>, vector<128x24xf32>, vector<16x24xf32> -> vector<16x24xf32>
    %cst_25 = arith.constant -1.000000e+30 : f32
    %37 = vector.broadcast %cst_25 : f32 to vector<16x24xf32>
    %38 = arith.select %32, %36, %37 : vector<16x24xi1>, vector<16x24xf32>
    %cst_26 = arith.constant dense<0xFF800000> : vector<16xf32>
    %39 = vector.multi_reduction <maximumf>, %38, %cst_26 [1] : vector<16x24xf32> to vector<16xf32>
    %40 = vector.shape_cast %39 : vector<16xf32> to vector<16x1xf32>
    %cst_27 = arith.constant dense<0.000000e+00> : vector<1xf32>
    %41 = vector.multi_reduction <add>, %40, %cst_27 [0] : vector<16x1xf32> to vector<1xf32>
    %42 = vector.shape_cast %41 : vector<1xf32> to vector<1x1xf32>
    %43 = vector.shape_cast %42 : vector<1x1xf32> to vector<1x1xf32>
    %44 = vector.broadcast %43 : vector<1x1xf32> to vector<1x128xf32>
    %c0_28 = arith.constant 0 : index
    %c0_29 = arith.constant 0 : index
    %45 = vector.load %arg10[%c0_28, %c0_29] : memref<2x128xf32, #tpu.memory_space<vmem>>, vector<1x128xf32>
    tpu.vector_store %arg10[%c0_28, %c0_29], %44 {strides = array<i32>} : memref<2x128xf32, #tpu.memory_space<vmem>>, vector<1x128xf32>,
    %46 = vector.extract_strided_slice %28 {offsets = [40, 0], sizes = [16, 128], strides = [1, 1]} : vector<80x128xf32> to vector<16x128xf32>
    %47 = vector.extract_strided_slice %28 {offsets = [56, 0], sizes = [24, 128], strides = [1, 1]} : vector<80x128xf32> to vector<24x128xf32>
    %48 = tpu.transpose %47, [1, 0] : vector<24x128xf32> -> vector<128x24xf32>
    %cst_30 = arith.constant dense<0.000000e+00> : vector<16x24xf32>
    %49 = tpu.matmul %46, %48, %cst_30 {dimension_numbers = #tpu.dot_dimension_numbers<[1], [0], [0], [1], [0, 0, 1, 1], [], []>} : vector<16x128xf32>, vector<128x24xf32>, vector<16x24xf32> -> vector<16x24xf32>
    %cst_31 = arith.constant -1.000000e+30 : f32
    %50 = vector.broadcast %cst_31 : f32 to vector<16x24xf32>
    %51 = arith.select %32, %49, %50 : vector<16x24xi1>, vector<16x24xf32>
    %cst_32 = arith.constant dense<0xFF800000> : vector<16xf32>
    %52 = vector.multi_reduction <maximumf>, %51, %cst_32 [1] : vector<16x24xf32> to vector<16xf32>
    %53 = vector.shape_cast %52 : vector<16xf32> to vector<16x1xf32>
    %cst_33 = arith.constant dense<0.000000e+00> : vector<1xf32>
    %54 = vector.multi_reduction <add>, %53, %cst_33 [0] : vector<16x1xf32> to vector<1xf32>
    %55 = vector.shape_cast %54 : vector<1xf32> to vector<1x1xf32>
    %56 = vector.shape_cast %55 : vector<1x1xf32> to vector<1x1xf32>
    %57 = vector.broadcast %56 : vector<1x1xf32> to vector<1x128xf32>
    %c1 = arith.constant 1 : index
    %c0_34 = arith.constant 0 : index
    %58 = vector.load %arg10[%c1, %c0_34] : memref<2x128xf32, #tpu.memory_space<vmem>>, vector<1x128xf32>
    tpu.vector_store %arg10[%c1, %c0_34], %57 {strides = array<i32>} : memref<2x128xf32, #tpu.memory_space<vmem>>, vector<1x128xf32>,
    return
  }
}

</mosaic_0001>

<bundles_post_ra>
// kernel: p0_colbert_forward.1
= control target key start
LH: loop header
LB: loop body
LE: loop exit
PB: predicated region body
PF: predicated region fallthrough
CT: control target
= control target key end

     0   :  { %16 = vsyncpa [#allocation3], 0  ;;  %s4975_s0 = inlined_call_operand.vmem [shape: bf16[10,128], index: 0, kind: input, shape index: {}]   ;;  %s4976_s1 = inlined_call_operand.hbm [shape: bf16[128,256], index: 1, kind: input, shape index: {}]   ;;  %s4977_s2 = inlined_call_operand.hbm [shape: f32[1,256], index: 2, kind: input, shape index: {}]   ;;  %s4978_s3 = inlined_call_operand.hbm [shape: bf16[256,3072], index: 3, kind: input, shape index: {}]   ;;  %s4979_s4 = inlined_call_operand.hbm [shape: f32[1,3072], index: 4, kind: input, shape index: {}]   ;;  %s4980_s5 = inlined_call_operand.vmem [shape: bf16[80,128], index: 5, kind: input, shape index: {}]   ;;  %s4981_s6 = inlined_call_operand.hbm [shape: bf16[128,128], index: 6, kind: input, shape index: {}]   ;;  %s4982_s7 = inlined_call_operand.vmem [shape: f32[80,1], index: 7, kind: input, shape index: {}]   ;;  %s4983_s8 = inlined_call_operand.vmem [shape: f32[10,3072], index: 8, kind: output, shape index: {0}]   ;;  %s4984_s9 = inlined_call_operand.vmem [shape: f32[80,128], index: 9, kind: output, shape index: {1}]   ;;  %s4985_s10 = inlined_call_operand.vmem [shape: f32[2,128], index: 10, kind: output, shape index: {2}]  }
   0x1   :  { %17 = vsyncpa [#allocation5], 0 }
   0x2   :  { %18 = vsyncpa [#allocation8], 0  ;;  %s4463_s13 = smov [#allocation4]   ;;  %s4464_s15 = smov [#allocation7]  }
   0x3   :  { %s39_s14 = sshll.u32 %s4463_s13, 4  ;;  %s61_s16 = sshll.u32 %s4464_s15, 4  ;;  %s40_s14 = int_to_ptr.vmem [resolvable:$true] %s39_s14  ;;  %s62_s16 = int_to_ptr.vmem [resolvable:$true] %s61_s16 }
   0x4   :  { %s4347_s19 = scalar_lea.hbm %s4977_s2, 32 }
   0x5   :  { %p4348_p0 = scmp.ne.s32.totalorder %s4977_s2, %s4347_s19  ;;  %p4351_p1 = scmp.lt.u32.totalorder %s4347_s19, %s4977_s2 }
   0x7   :  { %p4353_p2 = pnand %p4351_p1, %p4348_p0 }
   0x9   :  { %4356 = shalt.err (!%p4353_p2)
}
   0xa   :  { %s4357_s24 = scalar_lea.vmem %s40_s14, 32  ;;  %p4362_p4 = scmp.lt.s32.totalorder %s40_s14, %s40_s14 }
   0xb   :  { %p4358_p3 = scmp.ne.s32.totalorder %s40_s14, %s4357_s24  ;;  %p4363_p5 = scmp.lt.s32.totalorder %s4357_s24, %s4357_s24 }
   0xd   :  { %p4364_p6 = por %p4363_p5, %p4362_p4 }
   0xf   :  { %p4365_p7 = pnand %p4364_p6, %p4358_p3 }
  0x11   :  { %4368 = shalt.err (!%p4365_p7)
}
  0x12   :  { %42 = dma.hbm_to_vmem [thread:$0]  %s4977_s2, 32, %s40_s14, [#allocation5]  }
  0x13   :  { %s4369_s29 = scalar_lea.hbm %s4979_s4, 384 }
  0x14   :  { %p4370_p8 = scmp.ne.s32.totalorder %s4979_s4, %s4369_s29  ;;  %p4373_p9 = scmp.lt.u32.totalorder %s4369_s29, %s4979_s4 }
  0x16   :  { %p4375_p10 = pnand %p4373_p9, %p4370_p8 }
  0x18   :  { %4378 = shalt.err (!%p4375_p10)
}
  0x19   :  { %s4379_s15 = scalar_lea.vmem %s62_s16, 384  ;;  %p4384_p12 = scmp.lt.s32.totalorder %s62_s16, %s62_s16 }
  0x1a   :  { %p4380_p11 = scmp.ne.s32.totalorder %s62_s16, %s4379_s15  ;;  %p4385_p13 = scmp.lt.s32.totalorder %s4379_s15, %s4379_s15 }
  0x1c   :  { %p4386_p0 = por %p4385_p13, %p4384_p12 }
  0x1e   :  { %p4387_p1 = pnand %p4386_p0, %p4380_p11 }
  0x20   :  { %4390 = shalt.err (!%p4387_p1)
}
  0x21   :  { %64 = dma.hbm_to_vmem [thread:$0]  %s4979_s4, 384, %s62_s16, [#allocation8]  }
  0x22   :  { %s4465_s17 = smov [#allocation2]   ;;  %s4391_s21 = scalar_lea.hbm %s4976_s1, 2048 }
  0x23   :  { %s26_s18 = sshll.u32 %s4465_s17, 4  ;;  %p4392_p2 = scmp.ne.s32.totalorder %s4976_s1, %s4391_s21  ;;  %s27_s18 = int_to_ptr.vmem [resolvable:$true] %s26_s18 }
  0x24   :  { %p4395_p3 = scmp.lt.u32.totalorder %s4391_s21, %s4976_s1 }
  0x26   :  { %p4397_p4 = pnand %p4395_p3, %p4392_p2 }
  0x28   :  { %4400 = shalt.err (!%p4397_p4)
}
  0x29   :  { %s4401_s26 = scalar_lea.vmem %s27_s18, 2048  ;;  %p4406_p6 = scmp.lt.s32.totalorder %s27_s18, %s27_s18 }
  0x2a   :  { %p4402_p5 = scmp.ne.s32.totalorder %s27_s18, %s4401_s26  ;;  %p4407_p7 = scmp.lt.s32.totalorder %s4401_s26, %s4401_s26 }
  0x2c   :  { %p4408_p8 = por %p4407_p7, %p4406_p6 }
  0x2e   :  { %p4409_p9 = pnand %p4408_p8, %p4402_p5 }
  0x30   :  { %4412 = shalt.err (!%p4409_p9)
}
  0x31   :  { %s4466_s4 = smov 128   ;;  %s4467_s16 = smov 8  }
  0x32   :  { %32 = dma.hbm_to_vmem [thread:$0]  %s4976_s1, 2048, %s27_s18, [#allocation3], %s4466_s4, %s4466_s4, %s4467_s16  }
  0x33   :  { %s4468_s29 = smov [#allocation6]   ;;  %s4413_s13 = scalar_lea.hbm %s4978_s3, 49152 }
  0x34   :  { %s48_s30 = sshll.u32 %s4468_s29, 4  ;;  %p4414_p10 = scmp.ne.s32.totalorder %s4978_s3, %s4413_s13  ;;  %s49_s30 = int_to_ptr.vmem [resolvable:$true] %s48_s30 }
  0x35   :  { %p4417_p11 = scmp.lt.u32.totalorder %s4413_s13, %s4978_s3 }
  0x37   :  { %p4419_p12 = pnand %p4417_p11, %p4414_p10 }
  0x39   :  { %4422 = shalt.err (!%p4419_p12)
}
  0x3a   :  { %s4423_s19 = scalar_lea.vmem %s49_s30, 49152  ;;  %p4428_p0 = scmp.lt.s32.totalorder %s49_s30, %s49_s30 }
  0x3b   :  { %p4424_p13 = scmp.ne.s32.totalorder %s49_s30, %s4423_s19  ;;  %p4429_p1 = scmp.lt.s32.totalorder %s4423_s19, %s4423_s19 }
  0x3d   :  { %p4430_p2 = por %p4429_p1, %p4428_p0 }
  0x3f   :  { %p4431_p3 = pnand %p4430_p2, %p4424_p13 }
  0x41   :  { %4434 = shalt.err (!%p4431_p3)
}
  0x42   :  { %s4469_s1 = smov 1536   ;;  %s4470_s18 = smov 96  }
  0x43   :  { %54 = dma.hbm_to_vmem [thread:$0]  %s4978_s3, 49152, %s49_s30, [#allocation5], %s4469_s1, %s4469_s1, %s4470_s18  }
  0x44   :  { %s4471_s22 = smov [#allocation9]   ;;  %s4435_s26 = scalar_lea.hbm %s4981_s6, 1024 }
  0x45   :  { %s72_s23 = sshll.u32 %s4471_s22, 4  ;;  %p4436_p4 = scmp.ne.s32.totalorder %s4981_s6, %s4435_s26  ;;  %s73_s23 = int_to_ptr.vmem [resolvable:$true] %s72_s23 }
  0x46   :  { %p4439_p5 = scmp.lt.u32.totalorder %s4435_s26, %s4981_s6 }
  0x48   :  { %p4441_p6 = pnand %p4439_p5, %p4436_p4 }
  0x4a   :  { %4444 = shalt.err (!%p4441_p6)
}
  0x4b   :  { %s4445_s29 = scalar_lea.vmem %s73_s23, 1024  ;;  %p4450_p8 = scmp.lt.s32.totalorder %s73_s23, %s73_s23 }
  0x4c   :  { %p4446_p7 = scmp.ne.s32.totalorder %s73_s23, %s4445_s29  ;;  %p4451_p9 = scmp.lt.s32.totalorder %s4445_s29, %s4445_s29 }
  0x4e   :  { %p4452_p10 = por %p4451_p9, %p4450_p8 }
  0x50   :  { %p4453_p11 = pnand %p4452_p10, %p4446_p7 }
  0x52   :  { %4456 = shalt.err (!%p4453_p11)
}
  0x53   :  { %s4472_s3 = smov 64   ;;  %s4473_s30 = smov 4  }
  0x54   :  { %78 = dma.hbm_to_vmem [thread:$0]  %s4981_s6, 1024, %s73_s23, [#allocation8], %s4472_s3, %s4472_s3, %s4473_s30  }
  0x55   :  { %4457 = dma.done.wait [#allocation3], 2048  }
  0x56   :  { %4458 = vsyncadd [#allocation3], 4294965248 }
  0x57   :  { %4459 = dma.done.wait [#allocation5], 49184  }
  0x58   :  { %4460 = vsyncadd [#allocation5], 4294918112 }
  0x59   :  { %4461 = dma.done.wait [#allocation8], 1408  }
  0x5a   :  { %4462 = vsyncadd [#allocation8], 4294965888  ;;  %v4474_v0 = vmov 0   ;;  %v4289_v1 = vld [vmem:[#allocation2 + $0x4] ss:$8 sps:$4 sm:$0xff]   ;;  %vm4476_vm0 = vmmov 0  }
  0x5b   :  { %245 = vmatprep.mubr.bf16.mxu0 %v4474_v0  ;;  %4287 = vset.pattern.permute.xlu0 %v4474_v0  ;;  %v4291_v2 = vld [vmem:[#allocation2] ss:$8 sps:$4 sm:$0xff]   ;;  %v4292_v3 = vld [vmem:[#allocation2 + $0x14] ss:$8 sps:$4 sm:$0xff]   ;;  %v4294_v4 = vld [vmem:[#allocation2 + $0x10] ss:$8 sps:$4 sm:$0xff]  }
  0x5c   :  { %4288 = vset.pattern.permute.xlu1 %v4474_v0  ;;  %213 = vmatprep.subr.bf16.mxu0 %v4289_v1  ;;  %v4295_v5 = vld [vmem:[#allocation2 + $0x24] ss:$8 sps:$4 sm:$0xff]   ;;  %v4297_v6 = vld [vmem:[#allocation2 + $0x20] ss:$8 sps:$4 sm:$0xff]   ;;  %v4298_v7 = vld [vmem:[#allocation2 + $0x34] ss:$8 sps:$4 sm:$0xff]  }
  0x5d   :  { %214 = vmatpush1.bf16.msra.mxu0 %v4291_v2  ;;  %v4300_v8 = vld [vmem:[#allocation2 + $0x30] ss:$8 sps:$4 sm:$0xff]   ;;  %v262_v9 = vld [vmem:[#allocation6] sm:$0xff]  ;;  %v4304_v20 = vld [vmem:[#allocation2 + $0x54] ss:$8 sps:$4 sm:$0xff]   ;;  %vm3653_vm2 = vcmask 195584  }
  0x5e   :  { %215 = vmatprep.subr.bf16.mxu0 %v4292_v3  ;;  %v4301_v10 = vld [vmem:[#allocation2 + $0x44] ss:$8 sps:$4 sm:$0xff]   ;;  %v4303_v19 = vld [vmem:[#allocation2 + $0x40] ss:$8 sps:$4 sm:$0xff]   ;;  %v4306_v25 = vld [vmem:[#allocation2 + $0x50] ss:$8 sps:$4 sm:$0xff]  }
  0x5f   :  { %v274_v11 = vld [vmem:[#allocation6 + $0x60] sm:$0xff]  ;;  %v4310_v32 = vld [vmem:[#allocation2 + $0x74] ss:$8 sps:$4 sm:$0xff]   ;;  %v263_v34 = vld [vmem:[#allocation6 + $0x8] sm:$0xff] }
  0x60   :  { %v3792_v12 = vcombine.high %v262_v9, %v274_v11  ;;  %v3791_v13 = vcombine.low %v262_v9, %v274_v11  ;;  %v286_v14 = vld [vmem:[#allocation6 + $0xc0] sm:$0xff]  ;;  %v275_v35 = vld [vmem:[#allocation6 + $0x68] sm:$0xff] }
  0x61   :  { %216 = vmatpush1.bf16.msra.mxu0 %v4294_v4  ;;  %v298_v15 = vld [vmem:[#allocation6 + $0x120] sm:$0xff]  ;;  %v4312_v39 = vld [vmem:[#allocation2 + $0x70] ss:$8 sps:$4 sm:$0xff]   ;;  %v3794_v40 = vcombine.high %v263_v34, %v275_v35  ;;  %v3793_v48 = vcombine.low %v263_v34, %v275_v35 }
  0x62   :  { %217 = vmatprep.subr.bf16.mxu0 %v4295_v5  ;;  %v3816_v16 = vcombine.high %v286_v14, %v298_v15  ;;  %v310_v17 = vld [vmem:[#allocation6 + $0x180] sm:$0xff]  ;;  %2692 = vmatprep.subr.bf16.mxu1 %v3792_v12  ;;  %v3815_v21 = vcombine.low %v286_v14, %v298_v15  ;;  %v287_v43 = vld [vmem:[#allocation6 + $0xc8] sm:$0xff] }
  0x63   :  { %v322_v18 = vld [vmem:[#allocation6 + $0x1e0] sm:$0xff]  ;;  %2693 = vmatpush1.bf16.msra.mxu1 %v3791_v13  ;;  %v299_v44 = vld [vmem:[#allocation6 + $0x128] sm:$0xff] }
  0x64   :  { %2694 = vmatprep.subr.bf16.mxu1 %v3816_v16  ;;  %v3840_v22 = vcombine.high %v310_v17, %v322_v18  ;;  %v334_v23 = vld [vmem:[#allocation6 + $0x240] sm:$0xff]  ;;  %v3839_v27 = vcombine.low %v310_v17, %v322_v18  ;;  %v311_v49 = vld [vmem:[#allocation6 + $0x188] sm:$0xff]  ;;  %v3818_v51 = vcombine.high %v287_v43, %v299_v44  ;;  %v3817_v56 = vcombine.low %v287_v43, %v299_v44 }
  0x65   :  { %218 = vmatpush1.bf16.msra.mxu0 %v4297_v6  ;;  %v346_v24 = vld [vmem:[#allocation6 + $0x2a0] sm:$0xff]  ;;  %v323_v50 = vld [vmem:[#allocation6 + $0x1e8] sm:$0xff] }
  0x66   :  { %219 = vmatprep.subr.bf16.mxu0 %v4298_v7  ;;  %v4307_v26 = vld [vmem:[#allocation2 + $0x64] ss:$8 sps:$4 sm:$0xff]   ;;  %v3864_v28 = vcombine.high %v334_v23, %v346_v24  ;;  %v4309_v31 = vld [vmem:[#allocation2 + $0x60] ss:$8 sps:$4 sm:$0xff]   ;;  %v3863_v33 = vcombine.low %v334_v23, %v346_v24  ;;  %v3842_v59 = vcombine.high %v311_v49, %v323_v50  ;;  %v3841_v0 = vcombine.low %v311_v49, %v323_v50 }
  0x67   :  { %2695 = vmatpush1.bf16.msra.mxu1 %v3815_v21  ;;  %v358_v29 = vld [vmem:[#allocation6 + $0x300] sm:$0xff]  ;;  %v335_v57 = vld [vmem:[#allocation6 + $0x248] sm:$0xff] }
  0x68   :  { %2696 = vmatprep.subr.bf16.mxu1 %v3840_v22  ;;  %v370_v30 = vld [vmem:[#allocation6 + $0x360] sm:$0xff]  ;;  %v347_v58 = vld [vmem:[#allocation6 + $0x2a8] sm:$0xff] }
  0x69   :  { %220 = vmatpush1.bf16.msra.mxu0 %v4300_v8  ;;  %v3888_v36 = vcombine.high %v358_v29, %v370_v30  ;;  %v382_v37 = vld [vmem:[#allocation6 + $0x3c0] sm:$0xff]  ;;  %v3887_v41 = vcombine.low %v358_v29, %v370_v30  ;;  %v3866_v1 = vcombine.high %v335_v57, %v347_v58  ;;  %v359_v3 = vld [vmem:[#allocation6 + $0x308] sm:$0xff]  ;;  %v3865_v8 = vcombine.low %v335_v57, %v347_v58 }
  0x6a   :  { %221 = vmatprep.subr.bf16.mxu0 %v4301_v10  ;;  %v394_v38 = vld [vmem:[#allocation6 + $0x420] sm:$0xff]  ;;  %v371_v4 = vld [vmem:[#allocation6 + $0x368] sm:$0xff] }
  0x6b   :  { %2697 = vmatpush1.bf16.msra.mxu1 %v3839_v27  ;;  %v4313_v42 = vld [vmem:[%s4975_s0] sm:$0x1f]   ;;  %v3912_v45 = vcombine.high %v382_v37, %v394_v38  ;;  %v3911_v52 = vcombine.low %v382_v37, %v394_v38  ;;  %v3890_v9 = vcombine.high %v359_v3, %v371_v4  ;;  %v383_v11 = vld [vmem:[#allocation6 + $0x3c8] sm:$0xff]  ;;  %v3889_v16 = vcombine.low %v359_v3, %v371_v4 }
  0x6c   :  { %2698 = vmatprep.subr.bf16.mxu1 %v3864_v28  ;;  %v406_v46 = vld [vmem:[#allocation6 + $0x480] sm:$0xff]  ;;  %v395_v12 = vld [vmem:[#allocation6 + $0x428] sm:$0xff] }
  0x6d   :  { %222 = vmatpush1.bf16.msra.mxu0 %v4303_v19  ;;  %v418_v47 = vld [vmem:[#allocation6 + $0x4e0] sm:$0xff]  ;;  %v3914_v17 = vcombine.high %v383_v11, %v395_v12  ;;  %v407_v19 = vld [vmem:[#allocation6 + $0x488] sm:$0xff]  ;;  %v3913_v24 = vcombine.low %v383_v11, %v395_v12 }
  0x6e   :  { %223 = vmatprep.subr.bf16.mxu0 %v4304_v20  ;;  %v430_v53 = vld [vmem:[#allocation6 + $0x540] sm:$0xff]  ;;  %v3936_v55 = vcombine.high %v406_v46, %v418_v47  ;;  %v3935_v60 = vcombine.low %v406_v46, %v418_v47  ;;  %v419_v20 = vld [vmem:[#allocation6 + $0x4e8] sm:$0xff] }
  0x6f   :  { %2699 = vmatpush1.bf16.msra.mxu1 %v3863_v33  ;;  %v442_v54 = vld [vmem:[#allocation6 + $0x5a0] sm:$0xff]  ;;  %v431_v27 = vld [vmem:[#allocation6 + $0x548] sm:$0xff] }
  0x70   :  { %2700 = vmatprep.subr.bf16.mxu1 %v3888_v36  ;;  %v454_v61 = vld [vmem:[#allocation6 + $0x600] sm:$0xff]  ;;  %v3960_v63 = vcombine.high %v430_v53, %v442_v54  ;;  %v3959_v2 = vcombine.low %v430_v53, %v442_v54  ;;  %v443_v28 = vld [vmem:[#allocation6 + $0x5a8] sm:$0xff] }
  0x71   :  { %224 = vmatpush1.bf16.msra.mxu0 %v4306_v25  ;;  %v466_v62 = vld [vmem:[#allocation6 + $0x660] sm:$0xff]  ;;  %v3938_v25 = vcombine.high %v407_v19, %v419_v20  ;;  %v3962_v33 = vcombine.high %v431_v27, %v443_v28  ;;  %v455_v35 = vld [vmem:[#allocation6 + $0x608] sm:$0xff] }
  0x72   :  { %225 = vmatprep.subr.bf16.mxu0 %v4307_v26  ;;  %v3984_v5 = vcombine.high %v454_v61, %v466_v62  ;;  %v478_v6 = vld [vmem:[#allocation6 + $0x6c0] sm:$0xff]  ;;  %v3983_v10 = vcombine.low %v454_v61, %v466_v62  ;;  %v467_v36 = vld [vmem:[#allocation6 + $0x668] sm:$0xff] }
  0x73   :  { %2701 = vmatpush1.bf16.msra.mxu1 %v3887_v41  ;;  %v490_v7 = vld [vmem:[#allocation6 + $0x720] sm:$0xff]  ;;  %v3986_v41 = vcombine.high %v455_v35, %v467_v36  ;;  %v479_v43 = vld [vmem:[#allocation6 + $0x6c8] sm:$0xff]  ;;  %v3985_v46 = vcombine.low %v455_v35, %v467_v36 }
  0x74   :  { %2702 = vmatprep.subr.bf16.mxu1 %v3912_v45  ;;  %v4008_v13 = vcombine.high %v478_v6, %v490_v7  ;;  %v502_v14 = vld [vmem:[#allocation6 + $0x780] sm:$0xff]  ;;  %v4007_v18 = vcombine.low %v478_v6, %v490_v7  ;;  %v491_v44 = vld [vmem:[#allocation6 + $0x728] sm:$0xff] }
  0x75   :  { %226 = vmatpush1.bf16.msra.mxu0 %v4309_v31  ;;  %v514_v15 = vld [vmem:[#allocation6 + $0x7e0] sm:$0xff]  ;;  %v4010_v47 = vcombine.high %v479_v43, %v491_v44  ;;  %v503_v49 = vld [vmem:[#allocation6 + $0x788] sm:$0xff] }
  0x76   :  { %227 = vmatprep.subr.bf16.mxu0 %v4310_v32  ;;  %v4032_v21 = vcombine.high %v502_v14, %v514_v15  ;;  %v526_v22 = vld [vmem:[#allocation6 + $0x840] sm:$0xff]  ;;  %v4031_v26 = vcombine.low %v502_v14, %v514_v15  ;;  %v3937_v32 = vcombine.low %v407_v19, %v419_v20  ;;  %v515_v50 = vld [vmem:[#allocation6 + $0x7e8] sm:$0xff]  ;;  %v276_v19 = vld [vmem:[#allocation6 + $0x70] sm:$0xff] }
  0x77   :  { %2703 = vmatpush1.bf16.msra.mxu1 %v3911_v52  ;;  %v538_v23 = vld [vmem:[#allocation6 + $0x8a0] sm:$0xff]  ;;  %v4034_v52 = vcombine.high %v503_v49, %v515_v50  ;;  %v527_v53 = vld [vmem:[#allocation6 + $0x848] sm:$0xff]  ;;  %v265_v20 = vld [vmem:[#allocation6 + $0x18] sm:$0xff] }
  0x78   :  { %2704 = vmatprep.subr.bf16.mxu1 %v3936_v55  ;;  %v4056_v29 = vcombine.high %v526_v22, %v538_v23  ;;  %v550_v30 = vld [vmem:[#allocation6 + $0x900] sm:$0xff]  ;;  %v4055_v34 = vcombine.low %v526_v22, %v538_v23  ;;  %v539_v54 = vld [vmem:[#allocation6 + $0x8a8] sm:$0xff]  ;;  %v4033_v55 = vcombine.low %v503_v49, %v515_v50  ;;  %v277_v22 = vld [vmem:[#allocation6 + $0x78] sm:$0xff] }
  0x79   :  { %228 = vmatpush1.bf16.msra.mxu0 %v4312_v39  ;;  %v562_v31 = vld [vmem:[#allocation6 + $0x960] sm:$0xff]  ;;  %v551_v57 = vld [vmem:[#allocation6 + $0x908] sm:$0xff]  ;;  %v301_v49 = vld [vmem:[#allocation6 + $0x138] sm:$0xff] }
  0x7a   :  { %2735 = vmatprep.subr.bf16.mxu0 %v3794_v40  ;;  %v4080_v37 = vcombine.high %v550_v30, %v562_v31  ;;  %v574_v38 = vld [vmem:[#allocation6 + $0x9c0] sm:$0xff]  ;;  %v3961_v40 = vcombine.low %v431_v27, %v443_v28  ;;  %v563_v58 = vld [vmem:[#allocation6 + $0x968] sm:$0xff] }
  0x7b   :  { %2705 = vmatpush1.bf16.msra.mxu1 %v3935_v60  ;;  %v586_v39 = vld [vmem:[#allocation6 + $0xa20] sm:$0xff]  ;;  %v4082_v60 = vcombine.high %v551_v57, %v563_v58  ;;  %v575_v61 = vld [vmem:[#allocation6 + $0x9c8] sm:$0xff] }
  0x7c   :  { %246 = vmatmul.mubr.bf16.vlgmr.msra.gmra.mrb[0].mxu0 %v4313_v42  ;;  %2706 = vmatprep.subr.bf16.mxu1 %v3960_v63  ;;  %v4079_v42 = vcombine.low %v550_v30, %v562_v31  ;;  %v4104_v45 = vcombine.high %v574_v38, %v586_v39  ;;  %v587_v62 = vld [vmem:[#allocation6 + $0xa28] sm:$0xff]  ;;  %v4081_v63 = vcombine.low %v551_v57, %v563_v58  ;;  %v610_v3 = vld [vmem:[#allocation6 + $0xae0] sm:$0xff] }
  0x7d   :  { %2736 = vmatpush1.bf16.msra.mxu0 %v3793_v48  ;;  %v4103_v48 = vcombine.low %v574_v38, %v586_v39  ;;  %v599_v4 = vld [vmem:[#allocation6 + $0xa88] sm:$0xff]  ;;  %v634_v11 = vld [vmem:[#allocation6 + $0xba0] sm:$0xff] }
  0x7e   :  { %2737 = vmatprep.subr.bf16.mxu0 %v3818_v51  ;;  %v4009_v51 = vcombine.low %v479_v43, %v491_v44  ;;  %v611_v6 = vld [vmem:[#allocation6 + $0xae8] sm:$0xff] }
  0x7f   :  { %2707 = vmatpush1.bf16.msra.mxu1 %v3959_v2  ;;  %v598_v2 = vld [vmem:[#allocation6 + $0xa80] sm:$0xff]  ;;  %v4129_v7 = vcombine.low %v599_v4, %v611_v6  ;;  %v623_v12 = vld [vmem:[#allocation6 + $0xb48] sm:$0xff] }
  0x80   :  { %2708 = vmatprep.subr.bf16.mxu1 %v3984_v5  ;;  %v4128_v5 = vcombine.high %v598_v2, %v610_v3  ;;  %v635_v14 = vld [vmem:[#allocation6 + $0xba8] sm:$0xff] }
  0x81   :  { %2738 = vmatpush1.bf16.msra.mxu0 %v3817_v56  ;;  %v4058_v56 = vcombine.high %v527_v53, %v539_v54  ;;  %v4153_v15 = vcombine.low %v623_v12, %v635_v14 }
  0x82   :  { %2739 = vmatprep.subr.bf16.mxu0 %v3842_v59  ;;  %v4057_v59 = vcombine.low %v527_v53, %v539_v54  ;;  %v324_v54 = vld [vmem:[#allocation6 + $0x1f0] sm:$0xff] }
  0x83   :  { %2709 = vmatpush1.bf16.msra.mxu1 %v3983_v10  ;;  %v622_v10 = vld [vmem:[#allocation6 + $0xb40] sm:$0xff] }
  0x84   :  { %2710 = vmatprep.subr.bf16.mxu1 %v4008_v13  ;;  %v4152_v13 = vcombine.high %v622_v10, %v634_v11 }
  0x85   :  { %2740 = vmatpush1.bf16.msra.mxu0 %v3841_v0  ;;  %v4106_v0 = vcombine.high %v575_v61, %v587_v62 }
  0x86   :  { %2741 = vmatprep.subr.bf16.mxu0 %v3866_v1  ;;  %v4105_v1 = vcombine.low %v575_v61, %v587_v62  ;;  %v336_v61 = vld [vmem:[#allocation6 + $0x250] sm:$0xff] }
  0x87   :  { %2711 = vmatpush1.bf16.msra.mxu1 %v4007_v18  ;;  %v264_v18 = vld [vmem:[#allocation6 + $0x10] sm:$0xff] }
  0x88   :  { %2712 = vmatprep.subr.bf16.mxu1 %v4032_v21  ;;  %v3796_v21 = vcombine.high %v264_v18, %v276_v19  ;;  %v3795_v23 = vcombine.low %v264_v18, %v276_v19  ;;  %v348_v62 = vld [vmem:[#allocation6 + $0x2b0] sm:$0xff] }
  0x89   :  { %2742 = vmatpush1.bf16.msra.mxu0 %v3865_v8  ;;  %v4130_v8 = vcombine.high %v599_v4, %v611_v6  ;;  %v372_v6 = vld [vmem:[#allocation6 + $0x370] sm:$0xff] }
  0x8a   :  { %2743 = vmatprep.subr.bf16.mxu0 %v3890_v9  ;;  %v4127_v9 = vcombine.low %v598_v2, %v610_v3  ;;  %v3868_v3 = vcombine.high %v336_v61, %v348_v62 }
  0x8b   :  { %2713 = vmatpush1.bf16.msra.mxu1 %v4031_v26  ;;  %v117_v26 = vlaneseq }
  0x8c   :  { %2714 = vmatprep.subr.bf16.mxu1 %v4056_v29  ;;  %v115_v29 = vld [vmem:[#allocation4] sm:$0x3] }
  0x8d   :  { %2744 = vmatpush1.bf16.msra.mxu0 %v3889_v16  ;;  %v4154_v16 = vcombine.high %v623_v12, %v635_v14  ;;  %v4596_v27 = vshrl.u32 %v117_v26, 7  ;;  %v396_v14 = vld [vmem:[#allocation6 + $0x430] sm:$0xff] }
  0x8e   :  { %2745 = vmatprep.subr.bf16.mxu0 %v3914_v17  ;;  %v4151_v17 = vcombine.low %v622_v10, %v634_v11 }
  0x8f   :  { %2715 = vmatpush1.bf16.msra.mxu1 %v4055_v34  ;;  %v4599_v28 = vsub.s32 0, %v4596_v27  ;;  %v4602_v30 = vsub.s32 1, %v4596_v27 }
  0x90   :  { %2716 = vmatprep.subr.bf16.mxu1 %v4080_v37 }
  0x91   :  { %2746 = vmatpush1.bf16.msra.mxu0 %v3913_v24  ;;  %v3797_v24 = vcombine.low %v265_v20, %v277_v22  ;;  %v120_v31 = vrot.slane %v115_v29, %v4599_v28 }
  0x92   :  { %2747 = vmatprep.subr.bf16.mxu0 %v3938_v25  ;;  %v3798_v25 = vcombine.high %v265_v20, %v277_v22  ;;  %v420_v22 = vld [vmem:[#allocation6 + $0x4f0] sm:$0xff] }
  0x93   :  { %2717 = vmatpush1.bf16.msra.mxu1 %v4079_v42 }
  0x94   :  { %2718 = vmatprep.subr.bf16.mxu1 %v4104_v45  ;;  %v288_v45 = vld [vmem:[#allocation6 + $0xd0] sm:$0xff] }
  0x95   :  { %2748 = vmatpush1.bf16.msra.mxu0 %v3937_v32  ;;  %v124_v32 = vrot.slane %v115_v29, %v4602_v30 }
  0x96   :  { %2749 = vmatprep.subr.bf16.mxu0 %v3962_v33 }
  0x97   :  { %2719 = vmatpush1.bf16.msra.mxu1 %v4103_v48  ;;  %v289_v48 = vld [vmem:[#allocation6 + $0xd8] sm:$0xff] }
  0x98   :  { %2720 = vmatprep.subr.bf16.mxu1 %v4128_v5  ;;  %v3822_v53 = vcombine.high %v289_v48, %v301_v49  ;;  %v3821_v58 = vcombine.low %v289_v48, %v301_v49  ;;  %v360_v5 = vld [vmem:[#allocation6 + $0x310] sm:$0xff] }
  0x99   :  { %2750 = vmatpush1.bf16.msra.mxu0 %v3961_v40  ;;  %v3892_v11 = vcombine.high %v360_v5, %v372_v6 }
  0x9a   :  { %2751 = vmatprep.subr.bf16.mxu0 %v3986_v41 }
  0x9b   :  { %2721 = vmatpush1.bf16.msra.mxu1 %v4127_v9  ;;  %v3867_v9 = vcombine.low %v336_v61, %v348_v62  ;;  %v505_v61 = vld [vmem:[#allocation6 + $0x798] sm:$0xff] }
  0x9c   :  { %2722 = vmatprep.subr.bf16.mxu1 %v4152_v13  ;;  %v384_v13 = vld [vmem:[#allocation6 + $0x3d0] sm:$0xff]  ;;  %v517_v62 = vld [vmem:[#allocation6 + $0x7f8] sm:$0xff] }
  0x9d   :  { %2752 = vmatpush1.bf16.msra.mxu0 %v3985_v46  ;;  %v3916_v19 = vcombine.high %v384_v13, %v396_v14 }
  0x9e   :  { %2753 = vmatprep.subr.bf16.mxu0 %v4010_v47  ;;  %v300_v47 = vld [vmem:[#allocation6 + $0x130] sm:$0xff] }
  0x9f   :  { %2723 = vmatpush1.bf16.msra.mxu1 %v4151_v17  ;;  %v3819_v57 = vcombine.low %v288_v45, %v300_v47  ;;  %v3891_v17 = vcombine.low %v360_v5, %v372_v6  ;;  %v529_v5 = vld [vmem:[#allocation6 + $0x858] sm:$0xff] }
  0xa0   :  { %2778 = vmatprep.subr.bf16.mxu1 %v3796_v21  ;;  %v408_v21 = vld [vmem:[#allocation6 + $0x490] sm:$0xff]  ;;  %v541_v6 = vld [vmem:[#allocation6 + $0x8b8] sm:$0xff] }
  0xa1   :  { %2754 = vmatpush1.bf16.msra.mxu0 %v4009_v51  ;;  %v312_v51 = vld [vmem:[#allocation6 + $0x190] sm:$0xff] }
  0xa2   :  { %2755 = vmatprep.subr.bf16.mxu0 %v4034_v52  ;;  %v3820_v52 = vcombine.high %v288_v45, %v300_v47 }
  0xa5   :  { %2756 = vmatpush1.bf16.msra.mxu0 %v4033_v55  ;;  %v313_v55 = vld [vmem:[#allocation6 + $0x198] sm:$0xff] }
  0xa6   :  { %2757 = vmatprep.subr.bf16.mxu0 %v4058_v56  ;;  %v325_v56 = vld [vmem:[#allocation6 + $0x1f8] sm:$0xff] }
  0xa7   :  { %v3845_v2 = vcombine.low %v313_v55, %v325_v56 }
  0xa9   :  { %2758 = vmatpush1.bf16.msra.mxu0 %v4057_v59  ;;  %v3844_v59 = vcombine.high %v312_v51, %v324_v54 }
  0xaa   :  { %2759 = vmatprep.subr.bf16.mxu0 %v4082_v60  ;;  %v3846_v60 = vcombine.high %v313_v55, %v325_v56 }
  0xad   :  { %2760 = vmatpush1.bf16.msra.mxu0 %v4081_v63  ;;  %v337_v63 = vld [vmem:[#allocation6 + $0x258] sm:$0xff] }
  0xae   :  { %2761 = vmatprep.subr.bf16.mxu0 %v4106_v0  ;;  %v349_v0 = vld [vmem:[#allocation6 + $0x2b8] sm:$0xff] }
  0xaf   :  { %v3870_v4 = vcombine.high %v337_v63, %v349_v0  ;;  %v3869_v10 = vcombine.low %v337_v63, %v349_v0 }
  0xb1   :  { %2762 = vmatpush1.bf16.msra.mxu0 %v4105_v1  ;;  %v3843_v1 = vcombine.low %v312_v51, %v324_v54  ;;  %v480_v51 = vld [vmem:[#allocation6 + $0x6d0] sm:$0xff]  ;;  %v493_v54 = vld [vmem:[#allocation6 + $0x738] sm:$0xff] }
  0xb2   :  { %2763 = vmatprep.subr.bf16.mxu0 %v4130_v8  ;;  %v373_v8 = vld [vmem:[#allocation6 + $0x378] sm:$0xff] }
  0xb5   :  { %2764 = vmatpush1.bf16.msra.mxu0 %v4129_v7  ;;  %v361_v7 = vld [vmem:[#allocation6 + $0x318] sm:$0xff] }
  0xb6   :  { %2765 = vmatprep.subr.bf16.mxu0 %v4154_v16  ;;  %v3894_v12 = vcombine.high %v361_v7, %v373_v8  ;;  %v397_v16 = vld [vmem:[#allocation6 + $0x438] sm:$0xff]  ;;  %v3893_v18 = vcombine.low %v361_v7, %v373_v8  ;;  %v4037_v8 = vcombine.low %v505_v61, %v517_v62 }
  0xb9   :  { %2766 = vmatpush1.bf16.msra.mxu0 %v4153_v15  ;;  %v385_v15 = vld [vmem:[#allocation6 + $0x3d8] sm:$0xff] }
  0xba   :  { %2821 = vmatprep.subr.bf16.mxu0 %v3798_v25  ;;  %v3918_v20 = vcombine.high %v385_v15, %v397_v16  ;;  %v3915_v25 = vcombine.low %v384_v13, %v396_v14  ;;  %v3917_v29 = vcombine.low %v385_v15, %v397_v16  ;;  %v553_v13 = vld [vmem:[#allocation6 + $0x918] sm:$0xff]  ;;  %v4061_v16 = vcombine.low %v529_v5, %v541_v6 }
  0xbb   :  { %v565_v14 = vld [vmem:[#allocation6 + $0x978] sm:$0xff] }
 0x14f   :  { %v247_v33 = vpop.f32.mrb[0].mxu0 }
 0x150   :  { %v248_v34 = vadd.f32 %v247_v33, %v120_v31  ;;  %v249_v35 = vpop.f32.mrb[1].mxu0  ;;  %v432_v33 = vld [vmem:[#allocation6 + $0x550] sm:$0xff] }
 0x151   :  { %v250_v36 = vadd.f32 %v249_v35, %v124_v32  ;;  %v251_v37 = vpop.f32.mrb[2].mxu0  ;;  %v433_v35 = vld [vmem:[#allocation6 + $0x558] sm:$0xff] }
 0x152   :  { %v252_v38 = vadd.f32 %v251_v37, %v120_v31  ;;  %v253_v39 = vpop.f32.mrb[3].mxu0  ;;  %v256_v41 = vmax.f32 %v248_v34, 0.0  ;;  %v3940_v31 = vcombine.high %v408_v21, %v420_v22  ;;  %v444_v34 = vld [vmem:[#allocation6 + $0x5b0] sm:$0xff]  ;;  %v3939_v37 = vcombine.low %v408_v21, %v420_v22  ;;  %v577_v21 = vld [vmem:[#allocation6 + $0x9d8] sm:$0xff] }
 0x153   :  { %v254_v40 = vadd.f32 %v253_v39, %v124_v32  ;;  %v257_v43 = vmax.f32 %v250_v36, 0.0  ;;  %v445_v36 = vld [vmem:[#allocation6 + $0x5b8] sm:$0xff]  ;;  %v3964_v39 = vcombine.high %v432_v33, %v444_v34  ;;  %v3963_v45 = vcombine.low %v432_v33, %v444_v34 }
 0x154   :  { %v258_v42 = vmax.f32 %v252_v38, 0.0  ;;  %v3965_v47 = vcombine.low %v433_v35, %v445_v36  ;;  %v589_v22 = vld [vmem:[#allocation6 + $0xa38] sm:$0xff] }
 0x155   :  { %v259_v44 = vmax.f32 %v254_v40, 0.0  ;;  %v3966_v40 = vcombine.high %v433_v35, %v445_v36  ;;  %v601_v33 = vld [vmem:[#allocation6 + $0xa98] sm:$0xff]  ;;  %v4109_v36 = vcombine.low %v577_v21, %v589_v22 }
 0x156   :  { %v4606_v46 = vpack.c.bf16 %v258_v42, %v256_v41  ;;  %v456_v41 = vld [vmem:[#allocation6 + $0x610] sm:$0xff]  ;;  %v613_v34 = vld [vmem:[#allocation6 + $0xaf8] sm:$0xff] }
 0x157   :  { %v4608_v50 = vpack.c.bf16 %v259_v44, %v257_v43  ;;  %v468_v42 = vld [vmem:[#allocation6 + $0x670] sm:$0xff]  ;;  %v457_v43 = vld [vmem:[#allocation6 + $0x618] sm:$0xff] }
 0x158   :  { %v469_v44 = vld [vmem:[#allocation6 + $0x678] sm:$0xff]  ;;  %v3988_v48 = vcombine.high %v456_v41, %v468_v42  ;;  %v3987_v55 = vcombine.low %v456_v41, %v468_v42 }
 0x159   :  { %2724 = vmatprep.mubr.bf16.mxu1 %v4608_v50  ;;  %2767 = vmatprep.mubr.bf16.mxu0 %v4608_v50  ;;  %v3990_v49 = vcombine.high %v457_v43, %v469_v44  ;;  %v3989_v56 = vcombine.low %v457_v43, %v469_v44  ;;  %v625_v41 = vld [vmem:[#allocation6 + $0xb58] sm:$0xff]  ;;  %v4133_v44 = vcombine.low %v601_v33, %v613_v34 }
 0x15a   :  { %2725 = vmatmul.mubr.bf16.vlgmr.msra.gmra.mrb[0].mxu1 %v4606_v46  ;;  %2768 = vmatmul.mubr.bf16.vlgmr.msra.gmra.mrb[4].mxu0 %v4606_v46  ;;  %v637_v42 = vld [vmem:[#allocation6 + $0xbb8] sm:$0xff] }
 0x15b   :  { %2779 = vmatpush1.bf16.msra.mxu1 %v3795_v23  ;;  %2822 = vmatpush1.bf16.msra.mxu0 %v3797_v24  ;;  %v409_v23 = vld [vmem:[#allocation6 + $0x498] sm:$0xff] }
 0x15c   :  { %2810 = vmatprep.mubr.bf16.mxu1 %v4608_v50  ;;  %2853 = vmatprep.mubr.bf16.mxu0 %v4608_v50  ;;  %v421_v24 = vld [vmem:[#allocation6 + $0x4f8] sm:$0xff] }
 0x15d   :  { %2780 = vmatprep.subr.bf16.mxu1 %v3820_v52  ;;  %2823 = vmatprep.subr.bf16.mxu0 %v3822_v53  ;;  %v3942_v32 = vcombine.high %v409_v23, %v421_v24  ;;  %v3941_v38 = vcombine.low %v409_v23, %v421_v24  ;;  %v492_v52 = vld [vmem:[#allocation6 + $0x730] sm:$0xff]  ;;  %v481_v53 = vld [vmem:[#allocation6 + $0x6d8] sm:$0xff]  ;;  %v4085_v24 = vcombine.low %v553_v13, %v565_v14 }
 0x15e   :  { %v4011_v63 = vcombine.low %v480_v51, %v492_v52  ;;  %v4013_v0 = vcombine.low %v481_v53, %v493_v54 }
 0x15f   :  { %2781 = vmatpush1.bf16.msra.mxu1 %v3819_v57  ;;  %2824 = vmatpush1.bf16.msra.mxu0 %v3821_v58  ;;  %v4012_v57 = vcombine.high %v480_v51, %v492_v52  ;;  %v4014_v58 = vcombine.high %v481_v53, %v493_v54  ;;  %v267_v51 = vld [vmem:[#allocation6 + $0x28] sm:$0xff]  ;;  %v4157_v54 = vcombine.low %v625_v41, %v637_v42 }
 0x160   :  { %2782 = vmatprep.subr.bf16.mxu1 %v3844_v59  ;;  %2825 = vmatprep.subr.bf16.mxu0 %v3846_v60  ;;  %v504_v59 = vld [vmem:[#allocation6 + $0x790] sm:$0xff]  ;;  %v279_v52 = vld [vmem:[#allocation6 + $0x88] sm:$0xff] }
 0x161   :  { %v516_v60 = vld [vmem:[#allocation6 + $0x7f0] sm:$0xff] }
 0x162   :  { %v4035_v7 = vcombine.low %v504_v59, %v516_v60 }
 0x163   :  { %2783 = vmatpush1.bf16.msra.mxu1 %v3843_v1  ;;  %2826 = vmatpush1.bf16.msra.mxu0 %v3845_v2  ;;  %v4036_v1 = vcombine.high %v504_v59, %v516_v60  ;;  %v4038_v2 = vcombine.high %v505_v61, %v517_v62  ;;  %v291_v59 = vld [vmem:[#allocation6 + $0xe8] sm:$0xff]  ;;  %v3801_v62 = vcombine.low %v267_v51, %v279_v52 }
 0x164   :  { %2784 = vmatprep.subr.bf16.mxu1 %v3868_v3  ;;  %2827 = vmatprep.subr.bf16.mxu0 %v3870_v4  ;;  %v528_v3 = vld [vmem:[#allocation6 + $0x850] sm:$0xff]  ;;  %v303_v60 = vld [vmem:[#allocation6 + $0x148] sm:$0xff] }
 0x165   :  { %v540_v4 = vld [vmem:[#allocation6 + $0x8b0] sm:$0xff] }
 0x166   :  { %v4059_v15 = vcombine.low %v528_v3, %v540_v4 }
 0x167   :  { %2785 = vmatpush1.bf16.msra.mxu1 %v3867_v9  ;;  %2828 = vmatpush1.bf16.msra.mxu0 %v3869_v10  ;;  %v4060_v9 = vcombine.high %v528_v3, %v540_v4  ;;  %v4062_v10 = vcombine.high %v529_v5, %v541_v6  ;;  %v315_v3 = vld [vmem:[#allocation6 + $0x1a8] sm:$0xff]  ;;  %v3825_v6 = vcombine.low %v291_v59, %v303_v60 }
 0x168   :  { %2786 = vmatprep.subr.bf16.mxu1 %v3892_v11  ;;  %2829 = vmatprep.subr.bf16.mxu0 %v3894_v12  ;;  %v552_v11 = vld [vmem:[#allocation6 + $0x910] sm:$0xff]  ;;  %v327_v4 = vld [vmem:[#allocation6 + $0x208] sm:$0xff] }
 0x169   :  { %v564_v12 = vld [vmem:[#allocation6 + $0x970] sm:$0xff] }
 0x16a   :  { %v4083_v23 = vcombine.low %v552_v11, %v564_v12 }
 0x16b   :  { %2787 = vmatpush1.bf16.msra.mxu1 %v3891_v17  ;;  %2830 = vmatpush1.bf16.msra.mxu0 %v3893_v18  ;;  %v4084_v17 = vcombine.high %v552_v11, %v564_v12  ;;  %v4086_v18 = vcombine.high %v553_v13, %v565_v14  ;;  %v339_v11 = vld [vmem:[#allocation6 + $0x268] sm:$0xff]  ;;  %v3849_v14 = vcombine.low %v315_v3, %v327_v4 }
 0x16c   :  { %2788 = vmatprep.subr.bf16.mxu1 %v3916_v19  ;;  %2831 = vmatprep.subr.bf16.mxu0 %v3918_v20  ;;  %v576_v19 = vld [vmem:[#allocation6 + $0x9d0] sm:$0xff]  ;;  %v351_v12 = vld [vmem:[#allocation6 + $0x2c8] sm:$0xff] }
 0x16d   :  { %v588_v20 = vld [vmem:[#allocation6 + $0xa30] sm:$0xff] }
 0x16e   :  { %v4107_v35 = vcombine.low %v576_v19, %v588_v20 }
 0x16f   :  { %2789 = vmatpush1.bf16.msra.mxu1 %v3915_v25  ;;  %2832 = vmatpush1.bf16.msra.mxu0 %v3917_v29  ;;  %v4108_v25 = vcombine.high %v576_v19, %v588_v20  ;;  %v4110_v29 = vcombine.high %v577_v21, %v589_v22  ;;  %v363_v19 = vld [vmem:[#allocation6 + $0x328] sm:$0xff]  ;;  %v3873_v22 = vcombine.low %v339_v11, %v351_v12 }
 0x170   :  { %2790 = vmatprep.subr.bf16.mxu1 %v3940_v31  ;;  %2833 = vmatprep.subr.bf16.mxu0 %v3942_v32  ;;  %v600_v31 = vld [vmem:[#allocation6 + $0xa90] sm:$0xff]  ;;  %v375_v20 = vld [vmem:[#allocation6 + $0x388] sm:$0xff] }
 0x171   :  { %v612_v32 = vld [vmem:[#allocation6 + $0xaf0] sm:$0xff] }
 0x172   :  { %v4131_v43 = vcombine.low %v600_v31, %v612_v32 }
 0x173   :  { %2791 = vmatpush1.bf16.msra.mxu1 %v3939_v37  ;;  %2834 = vmatpush1.bf16.msra.mxu0 %v3941_v38  ;;  %v4132_v37 = vcombine.high %v600_v31, %v612_v32  ;;  %v4134_v38 = vcombine.high %v601_v33, %v613_v34  ;;  %v387_v31 = vld [vmem:[#allocation6 + $0x3e8] sm:$0xff]  ;;  %v3897_v34 = vcombine.low %v363_v19, %v375_v20 }
 0x174   :  { %2792 = vmatprep.subr.bf16.mxu1 %v3964_v39  ;;  %2835 = vmatprep.subr.bf16.mxu0 %v3966_v40  ;;  %v624_v39 = vld [vmem:[#allocation6 + $0xb50] sm:$0xff]  ;;  %v399_v32 = vld [vmem:[#allocation6 + $0x448] sm:$0xff] }
 0x175   :  { %v636_v40 = vld [vmem:[#allocation6 + $0xbb0] sm:$0xff] }
 0x176   :  { %v4155_v53 = vcombine.low %v624_v39, %v636_v40 }
 0x177   :  { %2793 = vmatpush1.bf16.msra.mxu1 %v3963_v45  ;;  %2836 = vmatpush1.bf16.msra.mxu0 %v3965_v47  ;;  %v4156_v45 = vcombine.high %v624_v39, %v636_v40  ;;  %v4158_v47 = vcombine.high %v625_v41, %v637_v42  ;;  %v411_v39 = vld [vmem:[#allocation6 + $0x4a8] sm:$0xff]  ;;  %v3921_v42 = vcombine.low %v387_v31, %v399_v32 }
 0x178   :  { %2794 = vmatprep.subr.bf16.mxu1 %v3988_v48  ;;  %2837 = vmatprep.subr.bf16.mxu0 %v3990_v49  ;;  %v266_v48 = vld [vmem:[#allocation6 + $0x20] sm:$0xff]  ;;  %v423_v40 = vld [vmem:[#allocation6 + $0x508] sm:$0xff] }
 0x179   :  { %v278_v49 = vld [vmem:[#allocation6 + $0x80] sm:$0xff] }
 0x17a   :  { %v3799_v61 = vcombine.low %v266_v48, %v278_v49 }
 0x17b   :  { %2795 = vmatpush1.bf16.msra.mxu1 %v3987_v55  ;;  %2838 = vmatpush1.bf16.msra.mxu0 %v3989_v56  ;;  %v3800_v55 = vcombine.high %v266_v48, %v278_v49  ;;  %v3802_v56 = vcombine.high %v267_v51, %v279_v52  ;;  %v435_v48 = vld [vmem:[#allocation6 + $0x568] sm:$0xff]  ;;  %v3945_v52 = vcombine.low %v411_v39, %v423_v40 }
 0x17c   :  { %2796 = vmatprep.subr.bf16.mxu1 %v4012_v57  ;;  %2839 = vmatprep.subr.bf16.mxu0 %v4014_v58  ;;  %v290_v57 = vld [vmem:[#allocation6 + $0xe0] sm:$0xff]  ;;  %v447_v49 = vld [vmem:[#allocation6 + $0x5c8] sm:$0xff] }
 0x17d   :  { %v302_v58 = vld [vmem:[#allocation6 + $0x140] sm:$0xff] }
 0x17e   :  { %v3823_v5 = vcombine.low %v290_v57, %v302_v58 }
 0x17f   :  { %2797 = vmatpush1.bf16.msra.mxu1 %v4011_v63  ;;  %2840 = vmatpush1.bf16.msra.mxu0 %v4013_v0  ;;  %v3824_v63 = vcombine.high %v290_v57, %v302_v58  ;;  %v3826_v0 = vcombine.high %v291_v59, %v303_v60  ;;  %v459_v57 = vld [vmem:[#allocation6 + $0x628] sm:$0xff]  ;;  %v3969_v60 = vcombine.low %v435_v48, %v447_v49 }
 0x180   :  { %2798 = vmatprep.subr.bf16.mxu1 %v4036_v1  ;;  %2841 = vmatprep.subr.bf16.mxu0 %v4038_v2  ;;  %v314_v1 = vld [vmem:[#allocation6 + $0x1a0] sm:$0xff]  ;;  %v471_v58 = vld [vmem:[#allocation6 + $0x688] sm:$0xff] }
 0x181   :  { %v326_v2 = vld [vmem:[#allocation6 + $0x200] sm:$0xff] }
 0x182   :  { %v3847_v13 = vcombine.low %v314_v1, %v326_v2 }
 0x183   :  { %2799 = vmatpush1.bf16.msra.mxu1 %v4035_v7  ;;  %2842 = vmatpush1.bf16.msra.mxu0 %v4037_v8  ;;  %v3848_v7 = vcombine.high %v314_v1, %v326_v2  ;;  %v3850_v8 = vcombine.high %v315_v3, %v327_v4  ;;  %v483_v1 = vld [vmem:[#allocation6 + $0x6e8] sm:$0xff]  ;;  %v3993_v4 = vcombine.low %v459_v57, %v471_v58 }
 0x184   :  { %2800 = vmatprep.subr.bf16.mxu1 %v4060_v9  ;;  %2843 = vmatprep.subr.bf16.mxu0 %v4062_v10  ;;  %v338_v9 = vld [vmem:[#allocation6 + $0x260] sm:$0xff]  ;;  %v495_v2 = vld [vmem:[#allocation6 + $0x748] sm:$0xff] }
 0x185   :  { %v350_v10 = vld [vmem:[#allocation6 + $0x2c0] sm:$0xff] }
 0x186   :  { %v3871_v21 = vcombine.low %v338_v9, %v350_v10 }
 0x187   :  { %2801 = vmatpush1.bf16.msra.mxu1 %v4059_v15  ;;  %2844 = vmatpush1.bf16.msra.mxu0 %v4061_v16  ;;  %v3872_v15 = vcombine.high %v338_v9, %v350_v10  ;;  %v3874_v16 = vcombine.high %v339_v11, %v351_v12  ;;  %v507_v9 = vld [vmem:[#allocation6 + $0x7a8] sm:$0xff]  ;;  %v4017_v12 = vcombine.low %v483_v1, %v495_v2 }
 0x188   :  { %2802 = vmatprep.subr.bf16.mxu1 %v4084_v17  ;;  %2845 = vmatprep.subr.bf16.mxu0 %v4086_v18  ;;  %v362_v17 = vld [vmem:[#allocation6 + $0x320] sm:$0xff]  ;;  %v519_v10 = vld [vmem:[#allocation6 + $0x808] sm:$0xff] }
 0x189   :  { %v374_v18 = vld [vmem:[#allocation6 + $0x380] sm:$0xff] }
 0x18a   :  { %v3895_v33 = vcombine.low %v362_v17, %v374_v18 }
 0x18b   :  { %2803 = vmatpush1.bf16.msra.mxu1 %v4083_v23  ;;  %2846 = vmatpush1.bf16.msra.mxu0 %v4085_v24  ;;  %v3896_v23 = vcombine.high %v362_v17, %v374_v18  ;;  %v3898_v24 = vcombine.high %v363_v19, %v375_v20  ;;  %v531_v17 = vld [vmem:[#allocation6 + $0x868] sm:$0xff]  ;;  %v4041_v20 = vcombine.low %v507_v9, %v519_v10 }
 0x18c   :  { %2804 = vmatprep.subr.bf16.mxu1 %v4108_v25  ;;  %2847 = vmatprep.subr.bf16.mxu0 %v4110_v29  ;;  %v386_v25 = vld [vmem:[#allocation6 + $0x3e0] sm:$0xff]  ;;  %v543_v18 = vld [vmem:[#allocation6 + $0x8c8] sm:$0xff] }
 0x18d   :  { %v398_v29 = vld [vmem:[#allocation6 + $0x440] sm:$0xff] }
 0x18e   :  { %v3919_v41 = vcombine.low %v386_v25, %v398_v29 }
 0x18f   :  { %2805 = vmatpush1.bf16.msra.mxu1 %v4107_v35  ;;  %2848 = vmatpush1.bf16.msra.mxu0 %v4109_v36  ;;  %v3920_v35 = vcombine.high %v386_v25, %v398_v29  ;;  %v3922_v36 = vcombine.high %v387_v31, %v399_v32  ;;  %v555_v25 = vld [vmem:[#allocation6 + $0x928] sm:$0xff]  ;;  %v4065_v32 = vcombine.low %v531_v17, %v543_v18 }
 0x190   :  { %2806 = vmatprep.subr.bf16.mxu1 %v4132_v37  ;;  %2849 = vmatprep.subr.bf16.mxu0 %v4134_v38  ;;  %v410_v37 = vld [vmem:[#allocation6 + $0x4a0] sm:$0xff]  ;;  %v567_v29 = vld [vmem:[#allocation6 + $0x988] sm:$0xff] }
 0x191   :  { %v422_v38 = vld [vmem:[#allocation6 + $0x500] sm:$0xff] }
 0x192   :  { %v3943_v51 = vcombine.low %v410_v37, %v422_v38 }
 0x193   :  { %2807 = vmatpush1.bf16.msra.mxu1 %v4131_v43  ;;  %2850 = vmatpush1.bf16.msra.mxu0 %v4133_v44  ;;  %v3944_v43 = vcombine.high %v410_v37, %v422_v38  ;;  %v3946_v44 = vcombine.high %v411_v39, %v423_v40  ;;  %v579_v37 = vld [vmem:[#allocation6 + $0x9e8] sm:$0xff]  ;;  %v4089_v40 = vcombine.low %v555_v25, %v567_v29 }
 0x194   :  { %2808 = vmatprep.subr.bf16.mxu1 %v4156_v45  ;;  %2851 = vmatprep.subr.bf16.mxu0 %v4158_v47  ;;  %v434_v45 = vld [vmem:[#allocation6 + $0x560] sm:$0xff]  ;;  %v591_v38 = vld [vmem:[#allocation6 + $0xa48] sm:$0xff] }
 0x195   :  { %v446_v47 = vld [vmem:[#allocation6 + $0x5c0] sm:$0xff] }
 0x196   :  { %v3967_v59 = vcombine.low %v434_v45, %v446_v47 }
 0x197   :  { %2809 = vmatpush1.bf16.msra.mxu1 %v4155_v53  ;;  %2852 = vmatpush1.bf16.msra.mxu0 %v4157_v54  ;;  %v3968_v53 = vcombine.high %v434_v45, %v446_v47  ;;  %v3970_v54 = vcombine.high %v435_v48, %v447_v49  ;;  %v603_v45 = vld [vmem:[#allocation6 + $0xaa8] sm:$0xff]  ;;  %v4113_v49 = vcombine.low %v579_v37, %v591_v38 }
 0x198   :  { %2864 = vmatprep.subr.bf16.mxu1 %v3800_v55  ;;  %2907 = vmatprep.subr.bf16.mxu0 %v3802_v56  ;;  %v458_v55 = vld [vmem:[#allocation6 + $0x620] sm:$0xff]  ;;  %v615_v47 = vld [vmem:[#allocation6 + $0xb08] sm:$0xff] }
 0x199   :  { %v470_v56 = vld [vmem:[#allocation6 + $0x680] sm:$0xff] }
 0x19a   :  { %2811 = vmatmul.mubr.bf16.vlgmr.msra.gmra.mrb[4].mxu1 %v4606_v46  ;;  %2854 = vmatmul.mubr.bf16.vlgmr.msra.gmra.mrb[8].mxu0 %v4606_v46  ;;  %v3991_v3 = vcombine.low %v458_v55, %v470_v56 }
 0x19b   :  { %2865 = vmatpush1.bf16.msra.mxu1 %v3799_v61  ;;  %2896 = vmatprep.mubr.bf16.mxu1 %v4608_v50  ;;  %v3992_v61 = vcombine.high %v458_v55, %v470_v56  ;;  %v627_v55 = vld [vmem:[#allocation6 + $0xb68] sm:$0xff] }
 0x19c   :  { %2908 = vmatpush1.bf16.msra.mxu0 %v3801_v62  ;;  %2939 = vmatprep.mubr.bf16.mxu0 %v4608_v50  ;;  %v3994_v62 = vcombine.high %v459_v57, %v471_v58  ;;  %v639_v56 = vld [vmem:[#allocation6 + $0xbc8] sm:$0xff]  ;;  %v4137_v58 = vcombine.low %v603_v45, %v615_v47 }
 0x19d   :  { %2866 = vmatprep.subr.bf16.mxu1 %v3824_v63  ;;  %2909 = vmatprep.subr.bf16.mxu0 %v3826_v0  ;;  %v482_v63 = vld [vmem:[#allocation6 + $0x6e0] sm:$0xff] }
 0x19e   :  { %v494_v0 = vld [vmem:[#allocation6 + $0x740] sm:$0xff] }
 0x19f   :  { %2867 = vmatpush1.bf16.msra.mxu1 %v3823_v5  ;;  %v4016_v5 = vcombine.high %v482_v63, %v494_v0  ;;  %v4015_v11 = vcombine.low %v482_v63, %v494_v0  ;;  %v269_v63 = vld [vmem:[#allocation6 + $0x38] sm:$0xff] }
 0x1a0   :  { %2910 = vmatpush1.bf16.msra.mxu0 %v3825_v6  ;;  %2868 = vmatprep.subr.bf16.mxu1 %v3848_v7  ;;  %v4018_v6 = vcombine.high %v483_v1, %v495_v2  ;;  %v506_v7 = vld [vmem:[#allocation6 + $0x7a0] sm:$0xff]  ;;  %v281_v0 = vld [vmem:[#allocation6 + $0x98] sm:$0xff]  ;;  %v4161_v2 = vcombine.low %v627_v55, %v639_v56 }
 0x1a1   :  { %2911 = vmatprep.subr.bf16.mxu0 %v3850_v8  ;;  %v518_v8 = vld [vmem:[#allocation6 + $0x800] sm:$0xff] }
 0x1a2   :  { %v4039_v19 = vcombine.low %v506_v7, %v518_v8 }
 0x1a3   :  { %2869 = vmatpush1.bf16.msra.mxu1 %v3847_v13  ;;  %v4040_v13 = vcombine.high %v506_v7, %v518_v8  ;;  %v293_v8 = vld [vmem:[#allocation6 + $0xf8] sm:$0xff] }
 0x1a4   :  { %2912 = vmatpush1.bf16.msra.mxu0 %v3849_v14  ;;  %2870 = vmatprep.subr.bf16.mxu1 %v3872_v15  ;;  %v4042_v14 = vcombine.high %v507_v9, %v519_v10  ;;  %v530_v15 = vld [vmem:[#allocation6 + $0x860] sm:$0xff]  ;;  %v305_v9 = vld [vmem:[#allocation6 + $0x158] sm:$0xff]  ;;  %v3805_v10 = vcombine.low %v269_v63, %v281_v0 }
 0x1a5   :  { %2913 = vmatprep.subr.bf16.mxu0 %v3874_v16  ;;  %v542_v16 = vld [vmem:[#allocation6 + $0x8c0] sm:$0xff] }
 0x1a6   :  { %v4063_v31 = vcombine.low %v530_v15, %v542_v16 }
 0x1a7   :  { %2871 = vmatpush1.bf16.msra.mxu1 %v3871_v21  ;;  %v4064_v21 = vcombine.high %v530_v15, %v542_v16  ;;  %v317_v15 = vld [vmem:[#allocation6 + $0x1b8] sm:$0xff] }
 0x1a8   :  { %2914 = vmatpush1.bf16.msra.mxu0 %v3873_v22  ;;  %2872 = vmatprep.subr.bf16.mxu1 %v3896_v23  ;;  %v4066_v22 = vcombine.high %v531_v17, %v543_v18  ;;  %v554_v23 = vld [vmem:[#allocation6 + $0x920] sm:$0xff]  ;;  %v329_v16 = vld [vmem:[#allocation6 + $0x218] sm:$0xff]  ;;  %v3829_v18 = vcombine.low %v293_v8, %v305_v9 }
 0x1a9   :  { %2915 = vmatprep.subr.bf16.mxu0 %v3898_v24  ;;  %v566_v24 = vld [vmem:[#allocation6 + $0x980] sm:$0xff] }
 0x1aa   :  { %v4087_v39 = vcombine.low %v554_v23, %v566_v24 }
 0x1ab   :  { %2873 = vmatpush1.bf16.msra.mxu1 %v3895_v33  ;;  %v4088_v33 = vcombine.high %v554_v23, %v566_v24  ;;  %v341_v23 = vld [vmem:[#allocation6 + $0x278] sm:$0xff] }
 0x1ac   :  { %2916 = vmatpush1.bf16.msra.mxu0 %v3897_v34  ;;  %2874 = vmatprep.subr.bf16.mxu1 %v3920_v35  ;;  %v4090_v34 = vcombine.high %v555_v25, %v567_v29  ;;  %v578_v35 = vld [vmem:[#allocation6 + $0x9e0] sm:$0xff]  ;;  %v353_v24 = vld [vmem:[#allocation6 + $0x2d8] sm:$0xff]  ;;  %v3853_v29 = vcombine.low %v317_v15, %v329_v16 }
 0x1ad   :  { %2917 = vmatprep.subr.bf16.mxu0 %v3922_v36  ;;  %v590_v36 = vld [vmem:[#allocation6 + $0xa40] sm:$0xff] }
 0x1ae   :  { %v4111_v48 = vcombine.low %v578_v35, %v590_v36 }
 0x1af   :  { %2875 = vmatpush1.bf16.msra.mxu1 %v3919_v41  ;;  %v4112_v41 = vcombine.high %v578_v35, %v590_v36  ;;  %v365_v35 = vld [vmem:[#allocation6 + $0x338] sm:$0xff] }
 0x1b0   :  { %2918 = vmatpush1.bf16.msra.mxu0 %v3921_v42  ;;  %2876 = vmatprep.subr.bf16.mxu1 %v3944_v43  ;;  %v4114_v42 = vcombine.high %v579_v37, %v591_v38  ;;  %v602_v43 = vld [vmem:[#allocation6 + $0xaa0] sm:$0xff]  ;;  %v377_v36 = vld [vmem:[#allocation6 + $0x398] sm:$0xff]  ;;  %v3877_v38 = vcombine.low %v341_v23, %v353_v24 }
 0x1b1   :  { %2919 = vmatprep.subr.bf16.mxu0 %v3946_v44  ;;  %v614_v44 = vld [vmem:[#allocation6 + $0xb00] sm:$0xff] }
 0x1b2   :  { %v4135_v57 = vcombine.low %v602_v43, %v614_v44 }
 0x1b3   :  { %2877 = vmatpush1.bf16.msra.mxu1 %v3943_v51  ;;  %v4136_v51 = vcombine.high %v602_v43, %v614_v44  ;;  %v389_v43 = vld [vmem:[#allocation6 + $0x3f8] sm:$0xff] }
 0x1b4   :  { %2920 = vmatpush1.bf16.msra.mxu0 %v3945_v52  ;;  %2878 = vmatprep.subr.bf16.mxu1 %v3968_v53  ;;  %v4138_v52 = vcombine.high %v603_v45, %v615_v47  ;;  %v626_v53 = vld [vmem:[#allocation6 + $0xb60] sm:$0xff]  ;;  %v401_v44 = vld [vmem:[#allocation6 + $0x458] sm:$0xff]  ;;  %v3901_v47 = vcombine.low %v365_v35, %v377_v36 }
 0x1b5   :  { %2921 = vmatprep.subr.bf16.mxu0 %v3970_v54  ;;  %v638_v54 = vld [vmem:[#allocation6 + $0xbc0] sm:$0xff] }
 0x1b6   :  { %v4159_v1 = vcombine.low %v626_v53, %v638_v54 }
 0x1b7   :  { %2879 = vmatpush1.bf16.msra.mxu1 %v3967_v59  ;;  %v4160_v59 = vcombine.high %v626_v53, %v638_v54  ;;  %v413_v53 = vld [vmem:[#allocation6 + $0x4b8] sm:$0xff] }
 0x1b8   :  { %2922 = vmatpush1.bf16.msra.mxu0 %v3969_v60  ;;  %2880 = vmatprep.subr.bf16.mxu1 %v3992_v61  ;;  %v4162_v60 = vcombine.high %v627_v55, %v639_v56  ;;  %v268_v61 = vld [vmem:[#allocation6 + $0x30] sm:$0xff]  ;;  %v425_v54 = vld [vmem:[#allocation6 + $0x518] sm:$0xff]  ;;  %v3925_v56 = vcombine.low %v389_v43, %v401_v44 }
 0x1b9   :  { %2923 = vmatprep.subr.bf16.mxu0 %v3994_v62  ;;  %v280_v62 = vld [vmem:[#allocation6 + $0x90] sm:$0xff] }
 0x1ba   :  { %v3803_v7 = vcombine.low %v268_v61, %v280_v62 }
 0x1bb   :  { %2881 = vmatpush1.bf16.msra.mxu1 %v3991_v3  ;;  %v3804_v3 = vcombine.high %v268_v61, %v280_v62  ;;  %v437_v61 = vld [vmem:[#allocation6 + $0x578] sm:$0xff] }
 0x1bc   :  { %2924 = vmatpush1.bf16.msra.mxu0 %v3993_v4  ;;  %2882 = vmatprep.subr.bf16.mxu1 %v4016_v5  ;;  %v3806_v4 = vcombine.high %v269_v63, %v281_v0  ;;  %v292_v5 = vld [vmem:[#allocation6 + $0xf0] sm:$0xff]  ;;  %v449_v62 = vld [vmem:[#allocation6 + $0x5d8] sm:$0xff]  ;;  %v3949_v0 = vcombine.low %v413_v53, %v425_v54 }
 0x1bd   :  { %2925 = vmatprep.subr.bf16.mxu0 %v4018_v6  ;;  %v304_v6 = vld [vmem:[#allocation6 + $0x150] sm:$0xff] }
 0x1be   :  { %v3827_v17 = vcombine.low %v292_v5, %v304_v6 }
 0x1bf   :  { %2883 = vmatpush1.bf16.msra.mxu1 %v4015_v11  ;;  %v3828_v11 = vcombine.high %v292_v5, %v304_v6  ;;  %v461_v5 = vld [vmem:[#allocation6 + $0x638] sm:$0xff] }
 0x1c0   :  { %2926 = vmatpush1.bf16.msra.mxu0 %v4017_v12  ;;  %2884 = vmatprep.subr.bf16.mxu1 %v4040_v13  ;;  %v316_v12 = vld [vmem:[#allocation6 + $0x1b0] sm:$0xff]  ;;  %v473_v6 = vld [vmem:[#allocation6 + $0x698] sm:$0xff] }
 0x1c1   :  { %2927 = vmatprep.subr.bf16.mxu0 %v4042_v14  ;;  %v328_v13 = vld [vmem:[#allocation6 + $0x210] sm:$0xff]  ;;  %v3830_v14 = vcombine.high %v293_v8, %v305_v9  ;;  %v3973_v8 = vcombine.low %v437_v61, %v449_v62 }
 0x1c2   :  { %v3851_v25 = vcombine.low %v316_v12, %v328_v13 }
 0x1c3   :  { %2885 = vmatpush1.bf16.msra.mxu1 %v4039_v19  ;;  %v3852_v19 = vcombine.high %v316_v12, %v328_v13  ;;  %v496_v12 = vld [vmem:[#allocation6 + $0x750] sm:$0xff]  ;;  %v485_v13 = vld [vmem:[#allocation6 + $0x6f8] sm:$0xff] }
 0x1c4   :  { %2928 = vmatpush1.bf16.msra.mxu0 %v4041_v20  ;;  %2886 = vmatprep.subr.bf16.mxu1 %v4064_v21  ;;  %v3854_v20 = vcombine.high %v317_v15, %v329_v16  ;;  %v340_v21 = vld [vmem:[#allocation6 + $0x270] sm:$0xff]  ;;  %v3997_v16 = vcombine.low %v461_v5, %v473_v6 }
 0x1c5   :  { %2929 = vmatprep.subr.bf16.mxu0 %v4066_v22  ;;  %v352_v22 = vld [vmem:[#allocation6 + $0x2d0] sm:$0xff] }
 0x1c6   :  { %v3875_v37 = vcombine.low %v340_v21, %v352_v22 }
 0x1c7   :  { %2887 = vmatpush1.bf16.msra.mxu1 %v4063_v31  ;;  %v3876_v31 = vcombine.high %v340_v21, %v352_v22  ;;  %v509_v21 = vld [vmem:[#allocation6 + $0x7b8] sm:$0xff] }
 0x1c8   :  { %2930 = vmatpush1.bf16.msra.mxu0 %v4065_v32  ;;  %2888 = vmatprep.subr.bf16.mxu1 %v4088_v33  ;;  %v3878_v32 = vcombine.high %v341_v23, %v353_v24  ;;  %v364_v33 = vld [vmem:[#allocation6 + $0x330] sm:$0xff]  ;;  %v521_v22 = vld [vmem:[#allocation6 + $0x818] sm:$0xff] }
 0x1c9   :  { %2931 = vmatprep.subr.bf16.mxu0 %v4090_v34  ;;  %v376_v34 = vld [vmem:[#allocation6 + $0x390] sm:$0xff] }
 0x1ca   :  { %v3899_v45 = vcombine.low %v364_v33, %v376_v34 }
 0x1cb   :  { %2889 = vmatpush1.bf16.msra.mxu1 %v4087_v39  ;;  %v3900_v39 = vcombine.high %v364_v33, %v376_v34  ;;  %v533_v33 = vld [vmem:[#allocation6 + $0x878] sm:$0xff] }
 0x1cc   :  { %2932 = vmatpush1.bf16.msra.mxu0 %v4089_v40  ;;  %2890 = vmatprep.subr.bf16.mxu1 %v4112_v41  ;;  %v3902_v40 = vcombine.high %v365_v35, %v377_v36  ;;  %v388_v41 = vld [vmem:[#allocation6 + $0x3f0] sm:$0xff]  ;;  %v545_v34 = vld [vmem:[#allocation6 + $0x8d8] sm:$0xff]  ;;  %v4045_v36 = vcombine.low %v509_v21, %v521_v22 }
 0x1cd   :  { %2933 = vmatprep.subr.bf16.mxu0 %v4114_v42  ;;  %v400_v42 = vld [vmem:[#allocation6 + $0x450] sm:$0xff] }
 0x1ce   :  { %v3923_v55 = vcombine.low %v388_v41, %v400_v42 }
 0x1cf   :  { %2891 = vmatpush1.bf16.msra.mxu1 %v4111_v48  ;;  %v3924_v48 = vcombine.high %v388_v41, %v400_v42  ;;  %v557_v41 = vld [vmem:[#allocation6 + $0x938] sm:$0xff] }
 0x1d0   :  { %2934 = vmatpush1.bf16.msra.mxu0 %v4113_v49  ;;  %2892 = vmatprep.subr.bf16.mxu1 %v4136_v51  ;;  %v3926_v49 = vcombine.high %v389_v43, %v401_v44  ;;  %v412_v51 = vld [vmem:[#allocation6 + $0x4b0] sm:$0xff]  ;;  %v569_v42 = vld [vmem:[#allocation6 + $0x998] sm:$0xff]  ;;  %v4069_v44 = vcombine.low %v533_v33, %v545_v34 }
 0x1d1   :  { %2935 = vmatprep.subr.bf16.mxu0 %v4138_v52  ;;  %v424_v52 = vld [vmem:[#allocation6 + $0x510] sm:$0xff] }
 0x1d2   :  { %v3947_v63 = vcombine.low %v412_v51, %v424_v52 }
 0x1d3   :  { %2893 = vmatpush1.bf16.msra.mxu1 %v4135_v57  ;;  %v3948_v57 = vcombine.high %v412_v51, %v424_v52  ;;  %v581_v51 = vld [vmem:[#allocation6 + $0x9f8] sm:$0xff] }
 0x1d4   :  { %2936 = vmatpush1.bf16.msra.mxu0 %v4137_v58  ;;  %2894 = vmatprep.subr.bf16.mxu1 %v4160_v59  ;;  %v3950_v58 = vcombine.high %v413_v53, %v425_v54  ;;  %v436_v59 = vld [vmem:[#allocation6 + $0x570] sm:$0xff]  ;;  %v593_v52 = vld [vmem:[#allocation6 + $0xa58] sm:$0xff]  ;;  %v4093_v54 = vcombine.low %v557_v41, %v569_v42 }
 0x1d5   :  { %2937 = vmatprep.subr.bf16.mxu0 %v4162_v60  ;;  %v448_v60 = vld [vmem:[#allocation6 + $0x5d0] sm:$0xff] }
 0x1d7   :  { %2895 = vmatpush1.bf16.msra.mxu1 %v4159_v1  ;;  %v3972_v1 = vcombine.high %v436_v59, %v448_v60 }
 0x1d8   :  { %2938 = vmatpush1.bf16.msra.mxu0 %v4161_v2  ;;  %2950 = vmatprep.subr.bf16.mxu1 %v3804_v3  ;;  %v3974_v2 = vcombine.high %v437_v61, %v449_v62  ;;  %v460_v3 = vld [vmem:[#allocation6 + $0x630] sm:$0xff]  ;;  %v4117_v62 = vcombine.low %v581_v51, %v593_v52 }
 0x1d9   :  { %2993 = vmatprep.subr.bf16.mxu0 %v3806_v4  ;;  %v472_v4 = vld [vmem:[#allocation6 + $0x690] sm:$0xff] }
 0x1da   :  { %2897 = vmatmul.mubr.bf16.vlgmr.msra.gmra.mrb[8].mxu1 %v4606_v46  ;;  %v3996_v9 = vcombine.high %v460_v3, %v472_v4  ;;  %v3995_v15 = vcombine.low %v460_v3, %v472_v4  ;;  %v629_v3 = vld [vmem:[#allocation6 + $0xb78] sm:$0xff] }
 0x1db   :  { %2940 = vmatmul.mubr.bf16.vlgmr.msra.gmra.mrb[12].mxu0 %v4606_v46  ;;  %2951 = vmatpush1.bf16.msra.mxu1 %v3803_v7  ;;  %v3971_v7 = vcombine.low %v436_v59, %v448_v60  ;;  %v605_v59 = vld [vmem:[#allocation6 + $0xab8] sm:$0xff] }
 0x1dc   :  { %2982 = vmatprep.mubr.bf16.mxu1 %v4608_v50  ;;  %2994 = vmatpush1.bf16.msra.mxu0 %v3805_v10  ;;  %v3998_v10 = vcombine.high %v461_v5, %v473_v6  ;;  %v617_v60 = vld [vmem:[#allocation6 + $0xb18] sm:$0xff] }
 0x1dd   :  { %3025 = vmatprep.mubr.bf16.mxu0 %v4608_v50  ;;  %2952 = vmatprep.subr.bf16.mxu1 %v3828_v11  ;;  %v484_v11 = vld [vmem:[#allocation6 + $0x6f0] sm:$0xff]  ;;  %v641_v4 = vld [vmem:[#allocation6 + $0xbd8] sm:$0xff]  ;;  %v4141_v6 = vcombine.low %v605_v59, %v617_v60 }
 0x1de   :  { %2995 = vmatprep.subr.bf16.mxu0 %v3830_v14  ;;  %v497_v14 = vld [vmem:[#allocation6 + $0x758] sm:$0xff]  ;;  %v4019_v23 = vcombine.low %v484_v11, %v496_v12 }
 0x1df   :  { %2953 = vmatpush1.bf16.msra.mxu1 %v3827_v17  ;;  %v4020_v17 = vcombine.high %v484_v11, %v496_v12  ;;  %v4021_v24 = vcombine.low %v485_v13, %v497_v14  ;;  %v271_v11 = vld [vmem:[#allocation6 + $0x48] sm:$0xff] }
 0x1e0   :  { %2996 = vmatpush1.bf16.msra.mxu0 %v3829_v18  ;;  %2954 = vmatprep.subr.bf16.mxu1 %v3852_v19  ;;  %v4022_v18 = vcombine.high %v485_v13, %v497_v14  ;;  %v508_v19 = vld [vmem:[#allocation6 + $0x7b0] sm:$0xff]  ;;  %v283_v12 = vld [vmem:[#allocation6 + $0xa8] sm:$0xff]  ;;  %v4165_v14 = vcombine.low %v629_v3, %v641_v4 }
 0x1e1   :  { %2997 = vmatprep.subr.bf16.mxu0 %v3854_v20  ;;  %v520_v20 = vld [vmem:[#allocation6 + $0x810] sm:$0xff] }
 0x1e2   :  { %v4043_v35 = vcombine.low %v508_v19, %v520_v20 }
 0x1e3   :  { %2955 = vmatpush1.bf16.msra.mxu1 %v3851_v25  ;;  %v4044_v25 = vcombine.high %v508_v19, %v520_v20  ;;  %v295_v20 = vld [vmem:[#allocation6 + $0x108] sm:$0xff] }
 0x1e4   :  { %2998 = vmatpush1.bf16.msra.mxu0 %v3853_v29  ;;  %2956 = vmatprep.subr.bf16.mxu1 %v3876_v31  ;;  %v4046_v29 = vcombine.high %v509_v21, %v521_v22  ;;  %v532_v31 = vld [vmem:[#allocation6 + $0x870] sm:$0xff]  ;;  %v307_v21 = vld [vmem:[#allocation6 + $0x168] sm:$0xff]  ;;  %v3809_v22 = vcombine.low %v271_v11, %v283_v12 }
 0x1e5   :  { %2999 = vmatprep.subr.bf16.mxu0 %v3878_v32  ;;  %v544_v32 = vld [vmem:[#allocation6 + $0x8d0] sm:$0xff] }
 0x1e6   :  { %v4067_v43 = vcombine.low %v532_v31, %v544_v32 }
 0x1e7   :  { %2957 = vmatpush1.bf16.msra.mxu1 %v3875_v37  ;;  %v4068_v37 = vcombine.high %v532_v31, %v544_v32  ;;  %v319_v31 = vld [vmem:[#allocation6 + $0x1c8] sm:$0xff] }
 0x1e8   :  { %3000 = vmatpush1.bf16.msra.mxu0 %v3877_v38  ;;  %2958 = vmatprep.subr.bf16.mxu1 %v3900_v39  ;;  %v4070_v38 = vcombine.high %v533_v33, %v545_v34  ;;  %v556_v39 = vld [vmem:[#allocation6 + $0x930] sm:$0xff]  ;;  %v331_v32 = vld [vmem:[#allocation6 + $0x228] sm:$0xff]  ;;  %v3833_v34 = vcombine.low %v295_v20, %v307_v21 }
 0x1e9   :  { %3001 = vmatprep.subr.bf16.mxu0 %v3902_v40  ;;  %v568_v40 = vld [vmem:[#allocation6 + $0x990] sm:$0xff] }
 0x1ea   :  { %v4091_v53 = vcombine.low %v556_v39, %v568_v40 }
 0x1eb   :  { %2959 = vmatpush1.bf16.msra.mxu1 %v3899_v45  ;;  %v4092_v45 = vcombine.high %v556_v39, %v568_v40  ;;  %v343_v39 = vld [vmem:[#allocation6 + $0x288] sm:$0xff] }
 0x1ec   :  { %3002 = vmatpush1.bf16.msra.mxu0 %v3901_v47  ;;  %2960 = vmatprep.subr.bf16.mxu1 %v3924_v48  ;;  %v4094_v47 = vcombine.high %v557_v41, %v569_v42  ;;  %v580_v48 = vld [vmem:[#allocation6 + $0x9f0] sm:$0xff]  ;;  %v355_v40 = vld [vmem:[#allocation6 + $0x2e8] sm:$0xff]  ;;  %v3857_v42 = vcombine.low %v319_v31, %v331_v32 }
 0x1ed   :  { %3003 = vmatprep.subr.bf16.mxu0 %v3926_v49  ;;  %v592_v49 = vld [vmem:[#allocation6 + $0xa50] sm:$0xff] }
 0x1ee   :  { %v4115_v61 = vcombine.low %v580_v48, %v592_v49 }
 0x1ef   :  { %2961 = vmatpush1.bf16.msra.mxu1 %v3923_v55  ;;  %v4116_v55 = vcombine.high %v580_v48, %v592_v49  ;;  %v367_v48 = vld [vmem:[#allocation6 + $0x348] sm:$0xff] }
 0x1f0   :  { %3004 = vmatpush1.bf16.msra.mxu0 %v3925_v56  ;;  %2962 = vmatprep.subr.bf16.mxu1 %v3948_v57  ;;  %v4118_v56 = vcombine.high %v581_v51, %v593_v52  ;;  %v604_v57 = vld [vmem:[#allocation6 + $0xab0] sm:$0xff]  ;;  %v379_v49 = vld [vmem:[#allocation6 + $0x3a8] sm:$0xff]  ;;  %v3881_v52 = vcombine.low %v343_v39, %v355_v40 }
 0x1f1   :  { %3005 = vmatprep.subr.bf16.mxu0 %v3950_v58  ;;  %v616_v58 = vld [vmem:[#allocation6 + $0xb10] sm:$0xff] }
 0x1f2   :  { %v4139_v5 = vcombine.low %v604_v57, %v616_v58 }
 0x1f3   :  { %2963 = vmatpush1.bf16.msra.mxu1 %v3947_v63  ;;  %v4140_v63 = vcombine.high %v604_v57, %v616_v58  ;;  %v4629_v57 = vsub.s32 2, %v4596_v27  ;;  %v391_v58 = vld [vmem:[#allocation6 + $0x408] sm:$0xff] }
 0x1f4   :  { %3006 = vmatpush1.bf16.msra.mxu0 %v3949_v0  ;;  %2964 = vmatprep.subr.bf16.mxu1 %v3972_v1  ;;  %v4142_v0 = vcombine.high %v605_v59, %v617_v60  ;;  %v628_v1 = vld [vmem:[#allocation6 + $0xb70] sm:$0xff]  ;;  %v403_v59 = vld [vmem:[#allocation6 + $0x468] sm:$0xff] }
 0x1f5   :  { %3007 = vmatprep.subr.bf16.mxu0 %v3974_v2  ;;  %v640_v2 = vld [vmem:[#allocation6 + $0xbd0] sm:$0xff] }
 0x1f6   :  { %v4163_v13 = vcombine.low %v628_v1, %v640_v2 }
 0x1f7   :  { %2965 = vmatpush1.bf16.msra.mxu1 %v3971_v7  ;;  %v4164_v7 = vcombine.high %v628_v1, %v640_v2  ;;  %v3930_v1 = vcombine.high %v391_v58, %v403_v59  ;;  %v414_v2 = vld [vmem:[#allocation6 + $0x4c0] sm:$0xff] }
 0x1f8   :  { %3008 = vmatpush1.bf16.msra.mxu0 %v3973_v8  ;;  %2966 = vmatprep.subr.bf16.mxu1 %v3996_v9  ;;  %v4166_v8 = vcombine.high %v629_v3, %v641_v4  ;;  %v270_v9 = vld [vmem:[#allocation6 + $0x40] sm:$0xff] }
 0x1f9   :  { %3009 = vmatprep.subr.bf16.mxu0 %v3998_v10  ;;  %v282_v10 = vld [vmem:[#allocation6 + $0xa0] sm:$0xff] }
 0x1fa   :  { %v3807_v19 = vcombine.low %v270_v9, %v282_v10  ;;  %v426_v3 = vld [vmem:[#allocation6 + $0x520] sm:$0xff] }
 0x1fb   :  { %2967 = vmatpush1.bf16.msra.mxu1 %v3995_v15  ;;  %v3808_v15 = vcombine.high %v270_v9, %v282_v10 }
 0x1fc   :  { %3010 = vmatpush1.bf16.msra.mxu0 %v3997_v16  ;;  %2968 = vmatprep.subr.bf16.mxu1 %v4020_v17  ;;  %v3810_v16 = vcombine.high %v271_v11, %v283_v12  ;;  %v294_v17 = vld [vmem:[#allocation6 + $0x100] sm:$0xff]  ;;  %v3929_v11 = vcombine.low %v391_v58, %v403_v59  ;;  %v3952_v12 = vcombine.high %v414_v2, %v426_v3 }
 0x1fd   :  { %3011 = vmatprep.subr.bf16.mxu0 %v4022_v18  ;;  %v306_v18 = vld [vmem:[#allocation6 + $0x160] sm:$0xff] }
 0x1fe   :  { %v3831_v33 = vcombine.low %v294_v17, %v306_v18 }
 0x1ff   :  { %2969 = vmatpush1.bf16.msra.mxu1 %v4019_v23  ;;  %v3832_v23 = vcombine.high %v294_v17, %v306_v18  ;;  %v450_v17 = vld [vmem:[#allocation6 + $0x5e0] sm:$0xff] }
 0x200   :  { %3012 = vmatpush1.bf16.msra.mxu0 %v4021_v24  ;;  %2970 = vmatprep.subr.bf16.mxu1 %v4044_v25  ;;  %v318_v24 = vld [vmem:[#allocation6 + $0x1c0] sm:$0xff] }
 0x201   :  { %3013 = vmatprep.subr.bf16.mxu0 %v4046_v29  ;;  %v330_v25 = vld [vmem:[#allocation6 + $0x220] sm:$0xff]  ;;  %v3834_v29 = vcombine.high %v295_v20, %v307_v21 }
 0x202   :  { %v3855_v41 = vcombine.low %v318_v24, %v330_v25 }
 0x203   :  { %2971 = vmatpush1.bf16.msra.mxu1 %v4043_v35  ;;  %v3856_v35 = vcombine.high %v318_v24, %v330_v25 }
 0x204   :  { %3014 = vmatpush1.bf16.msra.mxu0 %v4045_v36  ;;  %2972 = vmatprep.subr.bf16.mxu1 %v4068_v37  ;;  %v3858_v36 = vcombine.high %v319_v31, %v331_v32  ;;  %v342_v37 = vld [vmem:[#allocation6 + $0x280] sm:$0xff]  ;;  %v3951_v32 = vcombine.low %v414_v2, %v426_v3  ;;  %v523_v2 = vld [vmem:[#allocation6 + $0x828] sm:$0xff] }
 0x205   :  { %3015 = vmatprep.subr.bf16.mxu0 %v4070_v38  ;;  %v354_v38 = vld [vmem:[#allocation6 + $0x2e0] sm:$0xff] }
 0x206   :  { %v3879_v51 = vcombine.low %v342_v37, %v354_v38 }
 0x207   :  { %2973 = vmatpush1.bf16.msra.mxu1 %v4067_v43  ;;  %v3880_v43 = vcombine.high %v342_v37, %v354_v38 }
 0x208   :  { %3016 = vmatpush1.bf16.msra.mxu0 %v4069_v44  ;;  %2974 = vmatprep.subr.bf16.mxu1 %v4092_v45  ;;  %v3882_v44 = vcombine.high %v343_v39, %v355_v40  ;;  %v366_v45 = vld [vmem:[#allocation6 + $0x340] sm:$0xff] }
 0x209   :  { %3017 = vmatprep.subr.bf16.mxu0 %v4094_v47  ;;  %v378_v47 = vld [vmem:[#allocation6 + $0x3a0] sm:$0xff] }
 0x20a   :  { %v3903_v60 = vcombine.low %v366_v45, %v378_v47 }
 0x20b   :  { %2975 = vmatpush1.bf16.msra.mxu1 %v4091_v53  ;;  %v3904_v53 = vcombine.high %v366_v45, %v378_v47  ;;  %v475_v45 = vld [vmem:[#allocation6 + $0x6a8] sm:$0xff] }
 0x20c   :  { %3018 = vmatpush1.bf16.msra.mxu0 %v4093_v54  ;;  %2976 = vmatprep.subr.bf16.mxu1 %v4116_v55  ;;  %v3906_v54 = vcombine.high %v367_v48, %v379_v49  ;;  %v390_v55 = vld [vmem:[#allocation6 + $0x400] sm:$0xff] }
 0x20d   :  { %3019 = vmatprep.subr.bf16.mxu0 %v4118_v56  ;;  %v402_v56 = vld [vmem:[#allocation6 + $0x460] sm:$0xff] }
 0x20f   :  { %2977 = vmatpush1.bf16.msra.mxu1 %v4115_v61  ;;  %v4631_v61 = vld [vmem:[#allocation7] sm:$0xff] }
 0x210   :  { %3020 = vmatpush1.bf16.msra.mxu0 %v4117_v62  ;;  %2978 = vmatprep.subr.bf16.mxu1 %v4140_v63  ;;  %v4634_v62 = vsub.s32 3, %v4596_v27  ;;  %v3905_v63 = vcombine.low %v367_v48, %v379_v49  ;;  %v655_v4 = vrot.slane %v4631_v61, %v4599_v28  ;;  %v659_v9 = vrot.slane %v4631_v61, %v4602_v30 }
 0x211   :  { %3021 = vmatprep.subr.bf16.mxu0 %v4142_v0  ;;  %v3928_v0 = vcombine.high %v390_v55, %v402_v56 }
 0x212   :  { %v667_v10 = vrot.slane %v4631_v61, %v4634_v62 }
 0x213   :  { %2979 = vmatpush1.bf16.msra.mxu1 %v4139_v5  ;;  %v663_v5 = vrot.slane %v4631_v61, %v4629_v57 }
 0x214   :  { %3022 = vmatpush1.bf16.msra.mxu0 %v4141_v6  ;;  %2980 = vmatprep.subr.bf16.mxu1 %v4164_v7  ;;  %v415_v6 = vld [vmem:[#allocation6 + $0x4c8] sm:$0xff] }
 0x215   :  { %3023 = vmatprep.subr.bf16.mxu0 %v4166_v8  ;;  %v427_v7 = vld [vmem:[#allocation6 + $0x528] sm:$0xff]  ;;  %v3927_v8 = vcombine.low %v390_v55, %v402_v56 }
 0x216   :  { %v499_v55 = vld [vmem:[#allocation6 + $0x768] sm:$0xff] }
 0x217   :  { %2981 = vmatpush1.bf16.msra.mxu1 %v4163_v13 }
 0x218   :  { %3024 = vmatpush1.bf16.msra.mxu0 %v4165_v14  ;;  %3036 = vmatprep.subr.bf16.mxu1 %v3808_v15  ;;  %v3954_v15 = vcombine.high %v415_v6, %v427_v7 }
 0x219   :  { %3079 = vmatprep.subr.bf16.mxu0 %v3810_v16  ;;  %v438_v16 = vld [vmem:[#allocation6 + $0x580] sm:$0xff] }
 0x21a   :  { %2983 = vmatmul.mubr.bf16.vlgmr.msra.gmra.mrb[12].mxu1 %v4606_v46  ;;  %v3976_v38 = vcombine.high %v438_v16, %v450_v17  ;;  %v3975_v47 = vcombine.low %v438_v16, %v450_v17  ;;  %v570_v16 = vld [vmem:[#allocation6 + $0x9a0] sm:$0xff]  ;;  %v559_v17 = vld [vmem:[#allocation6 + $0x948] sm:$0xff] }
 0x21b   :  { %3026 = vmatmul.mubr.bf16.vlgmr.msra.gmra.mrb[16].mxu0 %v4606_v46  ;;  %3037 = vmatpush1.bf16.msra.mxu1 %v3807_v19 }
 0x21c   :  { %3068 = vmatprep.mubr.bf16.mxu1 %v4608_v50  ;;  %3080 = vmatpush1.bf16.msra.mxu0 %v3809_v22  ;;  %v439_v22 = vld [vmem:[#allocation6 + $0x588] sm:$0xff] }
 0x21d   :  { %3111 = vmatprep.mubr.bf16.mxu0 %v4608_v50  ;;  %3038 = vmatprep.subr.bf16.mxu1 %v3832_v23  ;;  %v451_v23 = vld [vmem:[#allocation6 + $0x5e8] sm:$0xff] }
 0x21e   :  { %3081 = vmatprep.subr.bf16.mxu0 %v3834_v29  ;;  %v3977_v48 = vcombine.low %v439_v22, %v451_v23 }
 0x21f   :  { %3039 = vmatpush1.bf16.msra.mxu1 %v3831_v33  ;;  %v3953_v33 = vcombine.low %v415_v6, %v427_v7  ;;  %v534_v7 = vld [vmem:[#allocation6 + $0x880] sm:$0xff] }
 0x220   :  { %3082 = vmatpush1.bf16.msra.mxu0 %v3833_v34  ;;  %3040 = vmatprep.subr.bf16.mxu1 %v3856_v35 }
 0x221   :  { %3083 = vmatprep.subr.bf16.mxu0 %v3858_v36 }
 0x223   :  { %3041 = vmatpush1.bf16.msra.mxu1 %v3855_v41  ;;  %v3978_v41 = vcombine.high %v439_v22, %v451_v23  ;;  %v582_v23 = vld [vmem:[#allocation6 + $0xa00] sm:$0xff] }
 0x224   :  { %3084 = vmatpush1.bf16.msra.mxu0 %v3857_v42  ;;  %3042 = vmatprep.subr.bf16.mxu1 %v3880_v43  ;;  %v462_v42 = vld [vmem:[#allocation6 + $0x640] sm:$0xff] }
 0x225   :  { %3085 = vmatprep.subr.bf16.mxu0 %v3882_v44  ;;  %v474_v43 = vld [vmem:[#allocation6 + $0x6a0] sm:$0xff]  ;;  %v463_v44 = vld [vmem:[#allocation6 + $0x648] sm:$0xff] }
 0x226   :  { %v4000_v49 = vcombine.high %v462_v42, %v474_v43  ;;  %v3999_v56 = vcombine.low %v462_v42, %v474_v43  ;;  %v4001_v58 = vcombine.low %v463_v44, %v475_v45  ;;  %v630_v43 = vld [vmem:[#allocation6 + $0xb80] sm:$0xff] }
 0x227   :  { %3043 = vmatpush1.bf16.msra.mxu1 %v3879_v51  ;;  %v4002_v51 = vcombine.high %v463_v44, %v475_v45  ;;  %v642_v44 = vld [vmem:[#allocation6 + $0xbe0] sm:$0xff]  ;;  %v631_v45 = vld [vmem:[#allocation6 + $0xb88] sm:$0xff] }
 0x228   :  { %3086 = vmatpush1.bf16.msra.mxu0 %v3881_v52  ;;  %3044 = vmatprep.subr.bf16.mxu1 %v3904_v53  ;;  %v486_v52 = vld [vmem:[#allocation6 + $0x700] sm:$0xff] }
 0x229   :  { %3087 = vmatprep.subr.bf16.mxu0 %v3906_v54  ;;  %v498_v53 = vld [vmem:[#allocation6 + $0x760] sm:$0xff]  ;;  %v487_v54 = vld [vmem:[#allocation6 + $0x708] sm:$0xff] }
 0x22a   :  { %v4024_v59 = vcombine.high %v486_v52, %v498_v53  ;;  %v4023_v3 = vcombine.low %v486_v52, %v498_v53  ;;  %v272_v53 = vld [vmem:[#allocation6 + $0x50] sm:$0xff] }
 0x22b   :  { %3045 = vmatpush1.bf16.msra.mxu1 %v3903_v60  ;;  %v4026_v60 = vcombine.high %v487_v54, %v499_v55 }
 0x22c   :  { %3088 = vmatpush1.bf16.msra.mxu0 %v3905_v63  ;;  %3046 = vmatprep.subr.bf16.mxu1 %v3928_v0  ;;  %v510_v63 = vld [vmem:[#allocation6 + $0x7c0] sm:$0xff] }
 0x22d   :  { %v2726_v13 = vpop.f32.mrb[0].mxu1  ;;  %v2769_v14 = vpop.f32.mrb[4].mxu0  ;;  %3089 = vmatprep.subr.bf16.mxu0 %v3930_v1  ;;  %v522_v0 = vld [vmem:[#allocation6 + $0x820] sm:$0xff]  ;;  %v511_v1 = vld [vmem:[#allocation6 + $0x7c8] sm:$0xff] }
 0x22e   :  { %v2727_v18 = vadd.f32 %v2726_v13, %v655_v4  ;;  %v2770_v19 = vadd.f32 %v2769_v14, %v663_v5  ;;  %v2728_v20 = vpop.f32.mrb[1].mxu1  ;;  %v2771_v21 = vpop.f32.mrb[5].mxu0  ;;  %v4050_v6 = vcombine.high %v511_v1, %v523_v2 }
 0x22f   :  { %v2729_v24 = vadd.f32 %v2728_v20, %v659_v9  ;;  %v2772_v25 = vadd.f32 %v2771_v21, %v667_v10  ;;  %3047 = vmatpush1.bf16.msra.mxu1 %v3927_v8  ;;  %v2730_v29 = vpop.f32.mrb[2].mxu1  ;;  %v2773_v31 = vpop.f32.mrb[6].mxu0  ;;  %v546_v8 = vld [vmem:[#allocation6 + $0x8e0] sm:$0xff] }
 0x230   :  { %3208 = vst [vmem:[%s4983_s8] sm:$0xff] %v2727_v18  ;;  %3210 = vst [vmem:[%s4983_s8 + $0x10] sm:$0xff] %v2770_v19  ;;  %3090 = vmatpush1.bf16.msra.mxu0 %v3929_v11  ;;  %v2731_v34 = vadd.f32 %v2730_v29, %v655_v4  ;;  %v2774_v35 = vadd.f32 %v2773_v31, %v663_v5  ;;  %v2732_v36 = vpop.f32.mrb[3].mxu1  ;;  %v2775_v37 = vpop.f32.mrb[7].mxu0  ;;  %3048 = vmatprep.subr.bf16.mxu1 %v3952_v12  ;;  %v571_v18 = vld [vmem:[#allocation6 + $0x9a8] sm:$0xff] }
 0x231   :  { %3209 = vst [vmem:[%s4983_s8 + $0x8] sm:$0xff] %v2729_v24  ;;  %3211 = vst [vmem:[%s4983_s8 + $0x18] sm:$0xff] %v2772_v25  ;;  %v2733_v39 = vadd.f32 %v2732_v36, %v659_v9  ;;  %v2776_v40 = vadd.f32 %v2775_v37, %v667_v10  ;;  %3091 = vmatprep.subr.bf16.mxu0 %v3954_v15  ;;  %v4025_v4 = vcombine.low %v487_v54, %v499_v55  ;;  %v535_v9 = vld [vmem:[#allocation6 + $0x888] sm:$0xff]  ;;  %v558_v15 = vld [vmem:[#allocation6 + $0x940] sm:$0xff] }
 0x232   :  { %3232 = vst [vmem:[%s4983_s8 + $0xc0] sm:$0x3] %v2731_v34  ;;  %3234 = vst [vmem:[%s4983_s8 + $0xd0] sm:$0x3] %v2774_v35  ;;  %v4048_v5 = vcombine.high %v510_v63, %v522_v0  ;;  %v547_v10 = vld [vmem:[#allocation6 + $0x8e8] sm:$0xff]  ;;  %v4047_v11 = vcombine.low %v510_v63, %v522_v0  ;;  %v4049_v12 = vcombine.low %v511_v1, %v523_v2  ;;  %v594_v24 = vld [vmem:[#allocation6 + $0xa60] sm:$0xff] }
 0x233   :  { %3233 = vst [vmem:[%s4983_s8 + $0xc8] sm:$0x3] %v2733_v39  ;;  %3235 = vst [vmem:[%s4983_s8 + $0xd8] sm:$0x3] %v2776_v40  ;;  %3049 = vmatpush1.bf16.msra.mxu1 %v3951_v32  ;;  %v4072_v13 = vcombine.high %v534_v7, %v546_v8  ;;  %v4074_v14 = vcombine.high %v535_v9, %v547_v10  ;;  %v4071_v19 = vcombine.low %v534_v7, %v546_v8  ;;  %v583_v25 = vld [vmem:[#allocation6 + $0xa08] sm:$0xff]  ;;  %v606_v35 = vld [vmem:[#allocation6 + $0xac0] sm:$0xff] }
 0x234   :  { %3092 = vmatpush1.bf16.msra.mxu0 %v3953_v33  ;;  %3050 = vmatprep.subr.bf16.mxu1 %v3976_v38  ;;  %v4073_v20 = vcombine.low %v535_v9, %v547_v10  ;;  %v4096_v21 = vcombine.high %v558_v15, %v570_v16  ;;  %v4098_v22 = vcombine.high %v559_v17, %v571_v18  ;;  %v595_v29 = vld [vmem:[#allocation6 + $0xa68] sm:$0xff]  ;;  %v618_v36 = vld [vmem:[#allocation6 + $0xb20] sm:$0xff]  ;;  %v284_v54 = vld [vmem:[#allocation6 + $0xb0] sm:$0xff] }
 0x235   :  { %3093 = vmatprep.subr.bf16.mxu0 %v3978_v41  ;;  %v4095_v31 = vcombine.low %v558_v15, %v570_v16  ;;  %v4097_v32 = vcombine.low %v559_v17, %v571_v18  ;;  %v4120_v33 = vcombine.high %v582_v23, %v594_v24  ;;  %v4122_v34 = vcombine.high %v583_v25, %v595_v29  ;;  %v607_v37 = vld [vmem:[#allocation6 + $0xac8] sm:$0xff]  ;;  %v273_v55 = vld [vmem:[#allocation6 + $0x58] sm:$0xff]  ;;  %v296_v0 = vld [vmem:[#allocation6 + $0x110] sm:$0xff] }
 0x236   :  { %v619_v38 = vld [vmem:[#allocation6 + $0xb28] sm:$0xff]  ;;  %v4119_v39 = vcombine.low %v582_v23, %v594_v24  ;;  %v4121_v40 = vcombine.low %v583_v25, %v595_v29  ;;  %v4144_v41 = vcombine.high %v606_v35, %v618_v36  ;;  %v308_v1 = vld [vmem:[#allocation6 + $0x170] sm:$0xff]  ;;  %v3811_v2 = vcombine.low %v272_v53, %v284_v54  ;;  %v321_v10 = vld [vmem:[#allocation6 + $0x1d8] sm:$0xff] }
 0x237   :  { %3051 = vmatpush1.bf16.msra.mxu1 %v3975_v47  ;;  %v4146_v42 = vcombine.high %v607_v37, %v619_v38  ;;  %v643_v47 = vld [vmem:[#allocation6 + $0xbe8] sm:$0xff]  ;;  %v320_v7 = vld [vmem:[#allocation6 + $0x1d0] sm:$0xff]  ;;  %v345_v18 = vld [vmem:[#allocation6 + $0x298] sm:$0xff] }
 0x238   :  { %3094 = vmatpush1.bf16.msra.mxu0 %v3977_v48  ;;  %3052 = vmatprep.subr.bf16.mxu1 %v4000_v49  ;;  %v4143_v48 = vcombine.low %v606_v35, %v618_v36  ;;  %v4145_v49 = vcombine.low %v607_v37, %v619_v38  ;;  %v4170_v52 = vcombine.high %v631_v45, %v643_v47  ;;  %v332_v8 = vld [vmem:[#allocation6 + $0x230] sm:$0xff]  ;;  %v369_v29 = vld [vmem:[#allocation6 + $0x358] sm:$0xff]  ;;  %v4673_v37 = vsub.s32 4, %v4596_v27 }
 0x239   :  { %3095 = vmatprep.subr.bf16.mxu0 %v4002_v51  ;;  %v4168_v51 = vcombine.high %v630_v43, %v642_v44  ;;  %v344_v16 = vld [vmem:[#allocation6 + $0x290] sm:$0xff]  ;;  %v4676_v38 = vsub.s32 6, %v4596_v27 }
 0x23a   :  { %v356_v17 = vld [vmem:[#allocation6 + $0x2f0] sm:$0xff] }
 0x23b   :  { %3053 = vmatpush1.bf16.msra.mxu1 %v3999_v56  ;;  %v285_v56 = vld [vmem:[#allocation6 + $0xb8] sm:$0xff]  ;;  %v368_v24 = vld [vmem:[#allocation6 + $0x350] sm:$0xff] }
 0x23c   :  { %3096 = vmatpush1.bf16.msra.mxu0 %v4001_v58  ;;  %3054 = vmatprep.subr.bf16.mxu1 %v4024_v59  ;;  %v4167_v58 = vcombine.low %v630_v43, %v642_v44  ;;  %v4169_v59 = vcombine.low %v631_v45, %v643_v47  ;;  %v3814_v63 = vcombine.high %v273_v55, %v285_v56  ;;  %v380_v25 = vld [vmem:[#allocation6 + $0x3b0] sm:$0xff]  ;;  %v4682_v43 = vsub.s32 7, %v4596_v27 }
 0x23d   :  { %3097 = vmatprep.subr.bf16.mxu0 %v4026_v60  ;;  %v3812_v60 = vcombine.high %v272_v53, %v284_v54  ;;  %v392_v35 = vld [vmem:[#allocation6 + $0x410] sm:$0xff]  ;;  %v417_v53 = vld [vmem:[#allocation6 + $0x4d8] sm:$0xff] }
 0x23e   :  { %v404_v36 = vld [vmem:[#allocation6 + $0x470] sm:$0xff]  ;;  %v429_v54 = vld [vmem:[#allocation6 + $0x538] sm:$0xff] }
 0x23f   :  { %3055 = vmatpush1.bf16.msra.mxu1 %v4023_v3  ;;  %v297_v3 = vld [vmem:[#allocation6 + $0x118] sm:$0xff]  ;;  %v3932_v45 = vcombine.high %v392_v35, %v404_v36 }
 0x240   :  { %3098 = vmatpush1.bf16.msra.mxu0 %v4025_v4  ;;  %3056 = vmatprep.subr.bf16.mxu1 %v4048_v5  ;;  %v309_v4 = vld [vmem:[#allocation6 + $0x178] sm:$0xff]  ;;  %v3813_v5 = vcombine.low %v273_v55, %v285_v56  ;;  %v683_v55 = vrot.slane %v4631_v61, %v4682_v43  ;;  %v3931_v56 = vcombine.low %v392_v35, %v404_v36  ;;  %v488_v35 = vld [vmem:[#allocation6 + $0x710] sm:$0xff] }
 0x241   :  { %3099 = vmatprep.subr.bf16.mxu0 %v4050_v6  ;;  %v3836_v6 = vcombine.high %v296_v0, %v308_v1  ;;  %v3838_v9 = vcombine.high %v297_v3, %v309_v4  ;;  %v500_v36 = vld [vmem:[#allocation6 + $0x770] sm:$0xff] }
 0x243   :  { %3057 = vmatpush1.bf16.msra.mxu1 %v4047_v11  ;;  %v333_v11 = vld [vmem:[#allocation6 + $0x238] sm:$0xff] }
 0x244   :  { %3100 = vmatpush1.bf16.msra.mxu0 %v4049_v12  ;;  %3058 = vmatprep.subr.bf16.mxu1 %v4072_v13  ;;  %v3835_v12 = vcombine.low %v296_v0, %v308_v1  ;;  %v3837_v13 = vcombine.low %v297_v3, %v309_v4  ;;  %v3862_v15 = vcombine.high %v321_v10, %v333_v11  ;;  %v440_v1 = vld [vmem:[#allocation6 + $0x590] sm:$0xff] }
 0x245   :  { %3101 = vmatprep.subr.bf16.mxu0 %v4074_v14  ;;  %v3860_v14 = vcombine.high %v320_v7, %v332_v8  ;;  %v3958_v0 = vcombine.high %v417_v53, %v429_v54 }
 0x247   :  { %3059 = vmatpush1.bf16.msra.mxu1 %v4071_v19  ;;  %v357_v19 = vld [vmem:[#allocation6 + $0x2f8] sm:$0xff] }
 0x248   :  { %3102 = vmatpush1.bf16.msra.mxu0 %v4073_v20  ;;  %3060 = vmatprep.subr.bf16.mxu1 %v4096_v21  ;;  %v3859_v20 = vcombine.low %v320_v7, %v332_v8  ;;  %v3861_v21 = vcombine.low %v321_v10, %v333_v11  ;;  %v3886_v23 = vcombine.high %v345_v18, %v357_v19  ;;  %v441_v7 = vld [vmem:[#allocation6 + $0x598] sm:$0xff] }
 0x249   :  { %3103 = vmatprep.subr.bf16.mxu0 %v4098_v22  ;;  %v3884_v22 = vcombine.high %v344_v16, %v356_v17  ;;  %v453_v8 = vld [vmem:[#allocation6 + $0x5f8] sm:$0xff] }
 0x24b   :  { %3061 = vmatpush1.bf16.msra.mxu1 %v4095_v31  ;;  %v381_v31 = vld [vmem:[#allocation6 + $0x3b8] sm:$0xff] }
 0x24c   :  { %3104 = vmatpush1.bf16.msra.mxu0 %v4097_v32  ;;  %3062 = vmatprep.subr.bf16.mxu1 %v4120_v33  ;;  %v3885_v32 = vcombine.low %v345_v18, %v357_v19  ;;  %v3908_v33 = vcombine.high %v368_v24, %v380_v25  ;;  %v3909_v44 = vcombine.low %v369_v29, %v381_v31 }
 0x24d   :  { %3105 = vmatprep.subr.bf16.mxu0 %v4122_v34  ;;  %v3910_v34 = vcombine.high %v369_v29, %v381_v31  ;;  %v3981_v31 = vcombine.low %v441_v7, %v453_v8 }
 0x24f   :  { %3063 = vmatpush1.bf16.msra.mxu1 %v4119_v39  ;;  %v393_v39 = vld [vmem:[#allocation6 + $0x418] sm:$0xff] }
 0x250   :  { %3106 = vmatpush1.bf16.msra.mxu0 %v4121_v40  ;;  %3064 = vmatprep.subr.bf16.mxu1 %v4144_v41  ;;  %v405_v40 = vld [vmem:[#allocation6 + $0x478] sm:$0xff]  ;;  %v3907_v41 = vcombine.low %v368_v24, %v380_v25 }
 0x251   :  { %3107 = vmatprep.subr.bf16.mxu0 %v4146_v42  ;;  %v4679_v42 = vsub.s32 5, %v4596_v27  ;;  %v3934_v47 = vcombine.high %v393_v39, %v405_v40  ;;  %v465_v24 = vld [vmem:[#allocation6 + $0x658] sm:$0xff] }
 0x252   :  { %v477_v25 = vld [vmem:[#allocation6 + $0x6b8] sm:$0xff] }
 0x253   :  { %3065 = vmatpush1.bf16.msra.mxu1 %v4143_v48  ;;  %v416_v48 = vld [vmem:[#allocation6 + $0x4d0] sm:$0xff]  ;;  %v675_v27 = vrot.slane %v4631_v61, %v4679_v42 }
 0x254   :  { %3108 = vmatpush1.bf16.msra.mxu0 %v4145_v49  ;;  %3066 = vmatprep.subr.bf16.mxu1 %v4168_v51  ;;  %v428_v49 = vld [vmem:[#allocation6 + $0x530] sm:$0xff]  ;;  %v671_v51 = vrot.slane %v4631_v61, %v4673_v37 }
 0x255   :  { %3109 = vmatprep.subr.bf16.mxu0 %v4170_v52  ;;  %v679_v52 = vrot.slane %v4631_v61, %v4676_v38 }
 0x257   :  { %3067 = vmatpush1.bf16.msra.mxu1 %v4167_v58  ;;  %v3933_v58 = vcombine.low %v393_v39, %v405_v40  ;;  %v489_v39 = vld [vmem:[#allocation6 + $0x718] sm:$0xff] }
 0x258   :  { %3110 = vmatpush1.bf16.msra.mxu0 %v4169_v59  ;;  %3122 = vmatprep.subr.bf16.mxu1 %v3812_v60  ;;  %v3956_v59 = vcombine.high %v416_v48, %v428_v49  ;;  %v501_v40 = vld [vmem:[#allocation6 + $0x778] sm:$0xff] }
 0x259   :  { %3165 = vmatprep.subr.bf16.mxu0 %v3814_v63 }
 0x25a   :  { %3069 = vmatmul.mubr.bf16.vlgmr.msra.gmra.mrb[16].mxu1 %v4606_v46 }
 0x25b   :  { %3112 = vmatmul.mubr.bf16.vlgmr.msra.gmra.mrb[20].mxu0 %v4606_v46  ;;  %3123 = vmatpush1.bf16.msra.mxu1 %v3811_v2  ;;  %v452_v2 = vld [vmem:[#allocation6 + $0x5f0] sm:$0xff] }
 0x25c   :  { %3154 = vmatprep.mubr.bf16.mxu1 %v4608_v50  ;;  %3166 = vmatpush1.bf16.msra.mxu0 %v3813_v5  ;;  %v3980_v18 = vcombine.high %v440_v1, %v452_v2  ;;  %v3979_v29 = vcombine.low %v440_v1, %v452_v2  ;;  %v537_v1 = vld [vmem:[#allocation6 + $0x898] sm:$0xff] }
 0x25d   :  { %3197 = vmatprep.mubr.bf16.mxu0 %v4608_v50  ;;  %3124 = vmatprep.subr.bf16.mxu1 %v3836_v6  ;;  %v3883_v50 = vcombine.low %v344_v16, %v356_v17  ;;  %v549_v2 = vld [vmem:[#allocation6 + $0x8f8] sm:$0xff] }
 0x25e   :  { %3167 = vmatprep.subr.bf16.mxu0 %v3838_v9 }
 0x25f   :  { %3125 = vmatpush1.bf16.msra.mxu1 %v3835_v12  ;;  %v3955_v12 = vcombine.low %v416_v48, %v428_v49  ;;  %v4028_v48 = vcombine.high %v488_v35, %v500_v36  ;;  %v4030_v49 = vcombine.high %v489_v39, %v501_v40 }
 0x260   :  { %3168 = vmatpush1.bf16.msra.mxu0 %v3837_v13  ;;  %3126 = vmatprep.subr.bf16.mxu1 %v3860_v14  ;;  %v3957_v13 = vcombine.low %v417_v53, %v429_v54  ;;  %v513_v53 = vld [vmem:[#allocation6 + $0x7d8] sm:$0xff] }
 0x261   :  { %3169 = vmatprep.subr.bf16.mxu0 %v3862_v15  ;;  %v525_v54 = vld [vmem:[#allocation6 + $0x838] sm:$0xff] }
 0x263   :  { %3127 = vmatpush1.bf16.msra.mxu1 %v3859_v20 }
 0x264   :  { %3170 = vmatpush1.bf16.msra.mxu0 %v3861_v21  ;;  %3128 = vmatprep.subr.bf16.mxu1 %v3884_v22  ;;  %v3982_v21 = vcombine.high %v441_v7, %v453_v8  ;;  %v464_v22 = vld [vmem:[#allocation6 + $0x650] sm:$0xff]  ;;  %v4078_v8 = vcombine.high %v537_v1, %v549_v2 }
 0x265   :  { %3171 = vmatprep.subr.bf16.mxu0 %v3886_v23  ;;  %v476_v23 = vld [vmem:[#allocation6 + $0x6b0] sm:$0xff] }
 0x267   :  { %3129 = vmatpush1.bf16.msra.mxu1 %v3883_v50  ;;  %v4004_v50 = vcombine.high %v464_v22, %v476_v23 }
 0x268   :  { %3172 = vmatpush1.bf16.msra.mxu0 %v3885_v32  ;;  %3130 = vmatprep.subr.bf16.mxu1 %v3908_v33  ;;  %v3435_v32 = vld [vmem:[%s4982_s7 + $0x10] sm:$0xff]  ;;  %v3437_v33 = vld [vmem:[%s4982_s7 + $0x20] sm:$0xff] }
 0x269   :  { %3173 = vmatprep.subr.bf16.mxu0 %v3910_v34  ;;  %v4006_v34 = vcombine.high %v465_v24, %v477_v25  ;;  %3455 = vperm.xlu0 %4287, %v3435_v32   ;;  %v621_v32 = vld [vmem:[#allocation6 + $0xb38] sm:$0xff] }
 0x26a   :  { %3465 = vperm.xlu1 %4288, %v3437_v33  }
 0x26b   :  { %3131 = vmatpush1.bf16.msra.mxu1 %v3907_v41  ;;  %v3436_v41 = vld [vmem:[%s4982_s7 + $0x18] sm:$0xff] }
 0x26c   :  { %3174 = vmatpush1.bf16.msra.mxu0 %v3909_v44  ;;  %3132 = vmatprep.subr.bf16.mxu1 %v3932_v45  ;;  %v4003_v44 = vcombine.low %v464_v22, %v476_v23  ;;  %v3440_v45 = vld [vmem:[%s4982_s7 + $0x38] sm:$0xff] }
 0x26d   :  { %v2812_v60 = vpop.f32.mrb[4].mxu1  ;;  %v2855_v63 = vpop.f32.mrb[8].mxu0  ;;  %3175 = vmatprep.subr.bf16.mxu0 %v3934_v47  ;;  %v4005_v47 = vcombine.low %v465_v24, %v477_v25  ;;  %3460 = vperm.xlu0 %4287, %v3436_v41   ;;  %v633_v41 = vld [vmem:[#allocation6 + $0xb98] sm:$0xff] }
 0x26e   :  { %v2813_v3 = vadd.f32 %v2812_v60, %v671_v51  ;;  %v2856_v4 = vadd.f32 %v2855_v63, %v679_v52  ;;  %v2814_v5 = vpop.f32.mrb[5].mxu1  ;;  %v2857_v6 = vpop.f32.mrb[9].mxu0  ;;  %3480 = vperm.xlu1 %4288, %v3440_v45   ;;  %v4054_v60 = vcombine.high %v513_v53, %v525_v54  ;;  %v536_v63 = vld [vmem:[#allocation6 + $0x890] sm:$0xff] }
 0x26f   :  { %v2815_v9 = vadd.f32 %v2814_v5, %v675_v27  ;;  %v2858_v10 = vadd.f32 %v2857_v6, %v683_v55  ;;  %v2816_v61 = vpop.f32.mrb[6].mxu1  ;;  %v2859_v11 = vpop.f32.mrb[10].mxu0  ;;  %3133 = vmatpush1.bf16.msra.mxu1 %v3931_v56  ;;  %v3433_v56 = vld [vmem:[%s4982_s7] sm:$0xff]  ;;  %v3442_v5 = vld [vmem:[%s4982_s7 + $0x48] sm:$0xff]  ;;  %v4053_v6 = vcombine.low %v513_v53, %v525_v54  ;;  %v4475_v54 = vmov 0.0  }
 0x270   :  { %3212 = vst [vmem:[%s4983_s8 + $0x20] sm:$0xff] %v2813_v3  ;;  %3214 = vst [vmem:[%s4983_s8 + $0x30] sm:$0xff] %v2856_v4  ;;  %v2817_v14 = vadd.f32 %v2816_v61, %v671_v51  ;;  %v2860_v15 = vadd.f32 %v2859_v11, %v679_v52  ;;  %3176 = vmatpush1.bf16.msra.mxu0 %v3933_v58  ;;  %v2818_v16 = vpop.f32.mrb[7].mxu1  ;;  %v2861_v17 = vpop.f32.mrb[11].mxu0  ;;  %3134 = vmatprep.subr.bf16.mxu1 %v3956_v59  ;;  %v512_v51 = vld [vmem:[#allocation6 + $0x7d0] sm:$0xff]  ;;  %v3434_v3 = vld [vmem:[%s4982_s7 + $0x8] sm:$0xff] }
 0x271   :  { %3213 = vst [vmem:[%s4983_s8 + $0x28] sm:$0xff] %v2815_v9  ;;  %3215 = vst [vmem:[%s4983_s8 + $0x38] sm:$0xff] %v2858_v10  ;;  %v2819_v19 = vadd.f32 %v2818_v16, %v675_v27  ;;  %v2862_v20 = vadd.f32 %v2861_v17, %v683_v55  ;;  %3177 = vmatprep.subr.bf16.mxu0 %v3958_v0  ;;  %v524_v52 = vld [vmem:[#allocation6 + $0x830] sm:$0xff]  ;;  %v3441_v27 = vld [vmem:[%s4982_s7 + $0x40] sm:$0xff]  ;;  %v4027_v55 = vcombine.low %v488_v35, %v500_v36 }
 0x272   :  { %3236 = vst [vmem:[%s4983_s8 + $0xe0] sm:$0x3] %v2817_v14  ;;  %3238 = vst [vmem:[%s4983_s8 + $0xf0] sm:$0x3] %v2860_v15  ;;  %v4029_v58 = vcombine.low %v489_v39, %v501_v40  ;;  %v4052_v59 = vcombine.high %v512_v51, %v524_v52  ;;  %v548_v0 = vld [vmem:[#allocation6 + $0x8f0] sm:$0xff]  ;;  %3485 = vperm.xlu0 %4287, %v3441_v27   ;;  %3445 = vperm.xlu1 %4288, %v3433_v56   ;;  %v561_v61 = vld [vmem:[#allocation6 + $0x958] sm:$0xff] }
 0x273   :  { %3237 = vst [vmem:[%s4983_s8 + $0xe8] sm:$0x3] %v2819_v19  ;;  %3239 = vst [vmem:[%s4983_s8 + $0xf8] sm:$0x3] %v2862_v20  ;;  %3135 = vmatpush1.bf16.msra.mxu1 %v3955_v12  ;;  %v4051_v4 = vcombine.low %v512_v51, %v524_v52  ;;  %v4076_v7 = vcombine.high %v536_v63, %v548_v0  ;;  %v560_v9 = vld [vmem:[#allocation6 + $0x950] sm:$0xff]  ;;  %v573_v11 = vld [vmem:[#allocation6 + $0x9b8] sm:$0xff]  ;;  %v4077_v15 = vcombine.low %v537_v1, %v549_v2 }
 0x274   :  { %3178 = vmatpush1.bf16.msra.mxu0 %v3957_v13  ;;  %3136 = vmatprep.subr.bf16.mxu1 %v3980_v18  ;;  %v572_v10 = vld [vmem:[#allocation6 + $0x9b0] sm:$0xff]  ;;  %v3438_v12 = vld [vmem:[%s4982_s7 + $0x28] sm:$0xff]  ;;  %v4075_v13 = vcombine.low %v536_v63, %v548_v0  ;;  %v4102_v17 = vcombine.high %v561_v61, %v573_v11  ;;  %v585_v20 = vld [vmem:[#allocation6 + $0xa18] sm:$0xff]  ;;  %v4101_v23 = vcombine.low %v561_v61, %v573_v11 }
 0x275   :  { %3179 = vmatprep.subr.bf16.mxu0 %v3982_v21  ;;  %v3439_v14 = vld [vmem:[%s4982_s7 + $0x30] sm:$0xff]  ;;  %v4100_v16 = vcombine.high %v560_v9, %v572_v10  ;;  %v597_v21 = vld [vmem:[#allocation6 + $0xa78] sm:$0xff]  ;;  %v4099_v22 = vcombine.low %v560_v9, %v572_v10  ;;  %v4315_v27 = vld [vmem:[#allocation9 + $0x8] sm:$0xff]  }
 0x276   :  { %3450 = vperm.xlu0 %4287, %v3434_v3   ;;  %3490 = vperm.xlu1 %4288, %v3442_v5   ;;  %v584_v18 = vld [vmem:[#allocation6 + $0xa10] sm:$0xff]  ;;  %v4126_v25 = vcombine.high %v585_v20, %v597_v21  ;;  %v4314_v53 = vld [vmem:[#allocation9] sm:$0xff]   ;;  %v4319_v0 = vld [vmem:[#allocation9 + $0x28] sm:$0xff]  }
 0x277   :  { %3137 = vmatpush1.bf16.msra.mxu1 %v3979_v29  ;;  %v596_v19 = vld [vmem:[#allocation6 + $0xa70] sm:$0xff]  ;;  %v4320_v10 = vld [vmem:[#allocation9 + $0x30] sm:$0xff]  }
 0x278   :  { %3180 = vmatpush1.bf16.msra.mxu0 %v3981_v31  ;;  %3138 = vmatprep.subr.bf16.mxu1 %v4004_v50  ;;  %v4124_v24 = vcombine.high %v584_v18, %v596_v19  ;;  %v608_v29 = vld [vmem:[#allocation6 + $0xad0] sm:$0xff]  ;;  %v609_v50 = vld [vmem:[#allocation6 + $0xad8] sm:$0xff]  ;;  %v4123_v33 = vcombine.low %v584_v18, %v596_v19 }
 0x279   :  { %3181 = vmatprep.subr.bf16.mxu0 %v4006_v34  ;;  %v620_v31 = vld [vmem:[#allocation6 + $0xb30] sm:$0xff]  ;;  %v4125_v34 = vcombine.low %v585_v20, %v597_v21  ;;  %v4150_v36 = vcombine.high %v609_v50, %v621_v32  ;;  %v4322_v19 = vld [vmem:[%s4980_s5] sm:$0xff]   ;;  %v4323_v20 = vld [vmem:[%s4980_s5 + $0x8] sm:$0xff]  }
 0x27a   :  { %3470 = vperm.xlu0 %4287, %v3438_v12   ;;  %3475 = vperm.xlu1 %4288, %v3439_v14   ;;  %v4148_v35 = vcombine.high %v608_v29, %v620_v31  ;;  %v632_v39 = vld [vmem:[#allocation6 + $0xb90] sm:$0xff]  ;;  %v4147_v45 = vcombine.low %v608_v29, %v620_v31 }
 0x27b   :  { %3139 = vmatpush1.bf16.msra.mxu1 %v4003_v44  ;;  %v644_v40 = vld [vmem:[#allocation6 + $0xbf0] sm:$0xff]  ;;  %v645_v44 = vld [vmem:[#allocation6 + $0xbf8] sm:$0xff] }
 0x27c   :  { %3182 = vmatpush1.bf16.msra.mxu0 %v4005_v47  ;;  %3140 = vmatprep.subr.bf16.mxu1 %v4028_v48  ;;  %v4149_v47 = vcombine.low %v609_v50, %v621_v32  ;;  %v4172_v48 = vcombine.high %v632_v39, %v644_v40  ;;  %v4171_v51 = vcombine.low %v632_v39, %v644_v40  ;;  %v4317_v56 = vld [vmem:[#allocation9 + $0x18] sm:$0xff]  }
 0x27d   :  { %3183 = vmatprep.subr.bf16.mxu0 %v4030_v49  ;;  %v4174_v49 = vcombine.high %v633_v41, %v645_v44  ;;  %v4173_v52 = vcombine.low %v633_v41, %v645_v44  ;;  %v4321_v18 = vld [vmem:[#allocation9 + $0x38] sm:$0xff]  }
 0x27e   :  { %v4324_v21 = vld [vmem:[%s4980_s5 + $0x10] sm:$0xff]  }
 0x27f   :  { %3141 = vmatpush1.bf16.msra.mxu1 %v4027_v55  ;;  %v4316_v55 = vld [vmem:[#allocation9 + $0x10] sm:$0xff]  }
 0x280   :  { %3184 = vmatpush1.bf16.msra.mxu0 %v4029_v58  ;;  %3142 = vmatprep.subr.bf16.mxu1 %v4052_v59  ;;  %v4318_v58 = vld [vmem:[#allocation9 + $0x20] sm:$0xff]   ;;  %v647_v59 = vld [vmem:[#allocation7 + $0x8] sm:$0xff] }
 0x281   :  { %3185 = vmatprep.subr.bf16.mxu0 %v4054_v60  ;;  %v695_v60 = vrot.slane %v647_v59, %v4629_v57  ;;  %v691_v63 = vrot.slane %v647_v59, %v4602_v30  ;;  %v699_v1 = vrot.slane %v647_v59, %v4634_v62  ;;  %v707_v29 = vrot.slane %v647_v59, %v4679_v42 }
 0x282   :  { %v715_v31 = vrot.slane %v647_v59, %v4682_v43 }
 0x283   :  { %3143 = vmatpush1.bf16.msra.mxu1 %v4051_v4 }
 0x284   :  { %3186 = vmatpush1.bf16.msra.mxu0 %v4053_v6  ;;  %3144 = vmatprep.subr.bf16.mxu1 %v4076_v7 }
 0x285   :  { %3187 = vmatprep.subr.bf16.mxu0 %v4078_v8 }
 0x287   :  { %3145 = vmatpush1.bf16.msra.mxu1 %v4075_v13 }
 0x288   :  { %3188 = vmatpush1.bf16.msra.mxu0 %v4077_v15  ;;  %3146 = vmatprep.subr.bf16.mxu1 %v4100_v16 }
 0x289   :  { %3189 = vmatprep.subr.bf16.mxu0 %v4102_v17 }
 0x28b   :  { %3147 = vmatpush1.bf16.msra.mxu1 %v4099_v22  ;;  %v4325_v22 = vld [vmem:[%s4980_s5 + $0x18] sm:$0xff]  }
 0x28c   :  { %3190 = vmatpush1.bf16.msra.mxu0 %v4101_v23  ;;  %3148 = vmatprep.subr.bf16.mxu1 %v4124_v24  ;;  %v4326_v23 = vld [vmem:[%s4980_s5 + $0x20] sm:$0xff]   ;;  %v703_v24 = vrot.slane %v647_v59, %v4673_v37 }
 0x28d   :  { %3191 = vmatprep.subr.bf16.mxu0 %v4126_v25  ;;  %v711_v25 = vrot.slane %v647_v59, %v4676_v38 }
 0x28f   :  { %3149 = vmatpush1.bf16.msra.mxu1 %v4123_v33 }
 0x290   :  { %3192 = vmatpush1.bf16.msra.mxu0 %v4125_v34  ;;  %3150 = vmatprep.subr.bf16.mxu1 %v4148_v35 }
 0x291   :  { %3193 = vmatprep.subr.bf16.mxu0 %v4150_v36 }
 0x293   :  { %3151 = vmatpush1.bf16.msra.mxu1 %v4147_v45 }
 0x294   :  { %3194 = vmatpush1.bf16.msra.mxu0 %v4149_v47  ;;  %3152 = vmatprep.subr.bf16.mxu1 %v4172_v48 }
 0x295   :  { %3195 = vmatprep.subr.bf16.mxu0 %v4174_v49 }
 0x297   :  { %3153 = vmatpush1.bf16.msra.mxu1 %v4171_v51 }
 0x298   :  { %3196 = vmatpush1.bf16.msra.mxu0 %v4173_v52  ;;  %4211 = vmatprep.subr.bf16.mxu1 %v4475_v54 }
 0x29a   :  { %3155 = vmatmul.mubr.bf16.vlgmr.msra.gmra.mrb[20].mxu1 %v4606_v46 }
 0x29b   :  { %3198 = vmatmul.mubr.bf16.vlgmr.msra.gmra.mrb[24].mxu0 %v4606_v46  ;;  %4212 = vmatpush3.bf16.msra.mxu1 %v4314_v53  ;;  %v687_v46 = vrot.slane %v647_v59, %v4599_v28  ;;  %v648_v53 = vld [vmem:[#allocation7 + $0x10] sm:$0xff] }
 0x29c   :  { %4213 = vmatprep.subr.bf16.mxu1 %v4475_v54  ;;  %4227 = vmatprep.mubr.msk.bf16.mxu1 %vm4476_vm0, %v4475_v54 }
 0x29f   :  { %4214 = vmatpush3.bf16.msra.mxu1 %v4315_v27  ;;  %v727_v27 = vrot.slane %v648_v53, %v4629_v57 }
 0x2a0   :  { %4215 = vmatprep.subr.bf16.mxu1 %v4475_v54 }
 0x2a3   :  { %4216 = vmatpush3.bf16.msra.mxu1 %v4316_v55  ;;  %v723_v55 = vrot.slane %v648_v53, %v4602_v30 }
 0x2a4   :  { %4217 = vmatprep.subr.bf16.mxu1 %v4475_v54 }
 0x2a7   :  { %4218 = vmatpush3.bf16.msra.mxu1 %v4317_v56  ;;  %v731_v56 = vrot.slane %v648_v53, %v4634_v62 }
 0x2a8   :  { %4219 = vmatprep.subr.bf16.mxu1 %v4475_v54 }
 0x2ab   :  { %4220 = vmatpush3.bf16.msra.mxu1 %v4318_v58 }
 0x2ac   :  { %4221 = vmatprep.subr.bf16.mxu1 %v4475_v54 }
 0x2ad   :  { %v2898_v2 = vpop.f32.mrb[8].mxu1 }
 0x2ae   :  { %v2899_v3 = vadd.f32 %v2898_v2, %v687_v46  ;;  %v2941_v4 = vpop.f32.mrb[12].mxu0  ;;  %v2900_v5 = vpop.f32.mrb[9].mxu1 }
 0x2af   :  { %v2942_v6 = vadd.f32 %v2941_v4, %v695_v60  ;;  %v2901_v7 = vadd.f32 %v2900_v5, %v691_v63  ;;  %v2943_v8 = vpop.f32.mrb[13].mxu0  ;;  %v2902_v9 = vpop.f32.mrb[10].mxu1  ;;  %4222 = vmatpush3.bf16.msra.mxu1 %v4319_v0 }
 0x2b0   :  { %3216 = vst [vmem:[%s4983_s8 + $0x40] sm:$0xff] %v2899_v3  ;;  %v2944_v61 = vadd.f32 %v2943_v8, %v699_v1  ;;  %v2903_v11 = vadd.f32 %v2902_v9, %v687_v46  ;;  %v2945_v12 = vpop.f32.mrb[14].mxu0  ;;  %v2904_v13 = vpop.f32.mrb[11].mxu1  ;;  %4223 = vmatprep.subr.bf16.mxu1 %v4475_v54  ;;  %v743_v8 = vrot.slane %v648_v53, %v4676_v38 }
 0x2b1   :  { %3218 = vst [vmem:[%s4983_s8 + $0x50] sm:$0xff] %v2942_v6  ;;  %3217 = vst [vmem:[%s4983_s8 + $0x48] sm:$0xff] %v2901_v7  ;;  %v2946_v14 = vadd.f32 %v2945_v12, %v695_v60  ;;  %v2905_v15 = vadd.f32 %v2904_v13, %v691_v63  ;;  %v2947_v16 = vpop.f32.mrb[15].mxu0  ;;  %v735_v7 = vrot.slane %v648_v53, %v4673_v37 }
 0x2b2   :  { %3219 = vst [vmem:[%s4983_s8 + $0x58] sm:$0xff] %v2944_v61  ;;  %3240 = vst [vmem:[%s4983_s8 + $0x100] sm:$0x3] %v2903_v11  ;;  %v2948_v17 = vadd.f32 %v2947_v16, %v699_v1  ;;  %v739_v9 = vrot.slane %v648_v53, %v4679_v42 }
 0x2b3   :  { %3242 = vst [vmem:[%s4983_s8 + $0x110] sm:$0x3] %v2946_v14  ;;  %3241 = vst [vmem:[%s4983_s8 + $0x108] sm:$0x3] %v2905_v15  ;;  %4224 = vmatpush3.bf16.msra.mxu1 %v4320_v10  ;;  %v747_v10 = vrot.slane %v648_v53, %v4682_v43 }
 0x2b4   :  { %3243 = vst [vmem:[%s4983_s8 + $0x118] sm:$0x3] %v2948_v17  ;;  %4225 = vmatprep.subr.bf16.mxu1 %v4475_v54 }
 0x2b7   :  { %4226 = vmatpush3.bf16.msra.mxu1 %v4321_v18 }
 0x2ba   :  { %4228 = vmatmul.mubr.bf16.vlgmr.msra.gmra.mrb[24].mxu1 %v4322_v19 }
 0x2bb   :  { %4231 = vmatprep.mubr.msk.bf16.mxu1 %vm4476_vm0, %v4475_v54 }
 0x2c2   :  { %4232 = vmatmul.mubr.bf16.gmra.mrb[28].mxu1 %v4323_v20 }
 0x2c3   :  { %4235 = vmatprep.mubr.msk.bf16.mxu1 %vm4476_vm0, %v4475_v54 }
 0x2ca   :  { %4236 = vmatmul.mubr.bf16.gmra.mrb[32].mxu1 %v4324_v21 }
 0x2cb   :  { %4239 = vmatprep.mubr.msk.bf16.mxu1 %vm4476_vm0, %v4475_v54 }
 0x2d2   :  { %4240 = vmatmul.mubr.bf16.gmra.mrb[36].mxu1 %v4325_v22 }
 0x2d3   :  { %4243 = vmatprep.mubr.msk.bf16.mxu1 %vm4476_vm0, %v4475_v54  ;;  %v719_v54 = vrot.slane %v648_v53, %v4599_v28 }
 0x2da   :  { %4244 = vmatmul.mubr.bf16.gmra.mrb[40].mxu1 %v4326_v23 }
 0x2ed   :  { %v2984_v50 = vpop.f32.mrb[12].mxu1 }
 0x2ee   :  { %v2985_v32 = vadd.f32 %v2984_v50, %v703_v24  ;;  %v3027_v33 = vpop.f32.mrb[16].mxu0  ;;  %v2986_v34 = vpop.f32.mrb[13].mxu1 }
 0x2ef   :  { %v3028_v35 = vadd.f32 %v3027_v33, %v711_v25  ;;  %v2987_v36 = vadd.f32 %v2986_v34, %v707_v29  ;;  %v3029_v39 = vpop.f32.mrb[17].mxu0  ;;  %v2988_v40 = vpop.f32.mrb[14].mxu1 }
 0x2f0   :  { %3220 = vst [vmem:[%s4983_s8 + $0x60] sm:$0xff] %v2985_v32  ;;  %v3030_v41 = vadd.f32 %v3029_v39, %v715_v31  ;;  %v2989_v44 = vadd.f32 %v2988_v40, %v703_v24  ;;  %v3031_v45 = vpop.f32.mrb[18].mxu0  ;;  %v2990_v47 = vpop.f32.mrb[15].mxu1 }
 0x2f1   :  { %3222 = vst [vmem:[%s4983_s8 + $0x70] sm:$0xff] %v3028_v35  ;;  %3221 = vst [vmem:[%s4983_s8 + $0x68] sm:$0xff] %v2987_v36  ;;  %v3032_v48 = vadd.f32 %v3031_v45, %v711_v25  ;;  %v2991_v49 = vadd.f32 %v2990_v47, %v707_v29  ;;  %v3033_v51 = vpop.f32.mrb[19].mxu0  ;;  %v3456_v29 = vpop.permute.xlu0 %3455 }
 0x2f2   :  { %3223 = vst [vmem:[%s4983_s8 + $0x78] sm:$0xff] %v3030_v41  ;;  %3244 = vst [vmem:[%s4983_s8 + $0x120] sm:$0x3] %v2989_v44  ;;  %v3034_v52 = vadd.f32 %v3033_v51, %v715_v31  ;;  %v3466_v40 = vpop.permute.xlu1 %3465 }
 0x2f3   :  { %3246 = vst [vmem:[%s4983_s8 + $0x130] sm:$0x3] %v3032_v48  ;;  %3245 = vst [vmem:[%s4983_s8 + $0x128] sm:$0x3] %v2991_v49 }
 0x2f4   :  { %3247 = vst [vmem:[%s4983_s8 + $0x138] sm:$0x3] %v3034_v52 }
 0x2f5   :  { %v3461_v33 = vpop.permute.xlu0 %3460 }
 0x2f6   :  { %v3481_v48 = vpop.permute.xlu1 %3480 }
 0x2fa   :  { %v3446_v53 = vpop.permute.xlu1 %3445 }
 0x32d   :  { %v3070_v58 = vpop.f32.mrb[16].mxu1 }
 0x32e   :  { %v3071_v59 = vadd.f32 %v3070_v58, %v719_v54  ;;  %v3113_v46 = vpop.f32.mrb[20].mxu0  ;;  %v3072_v60 = vpop.f32.mrb[17].mxu1 }
 0x32f   :  { %v3114_v63 = vadd.f32 %v3113_v46, %v727_v27  ;;  %v3073_v0 = vadd.f32 %v3072_v60, %v723_v55  ;;  %v3115_v1 = vpop.f32.mrb[21].mxu0  ;;  %v3074_v2 = vpop.f32.mrb[18].mxu1 }
 0x330   :  { %3224 = vst [vmem:[%s4983_s8 + $0x80] sm:$0xff] %v3071_v59  ;;  %v3116_v3 = vadd.f32 %v3115_v1, %v731_v56  ;;  %v3075_v28 = vadd.f32 %v3074_v2, %v719_v54  ;;  %v3117_v4 = vpop.f32.mrb[22].mxu0  ;;  %v3076_v57 = vpop.f32.mrb[19].mxu1 }
 0x331   :  { %3226 = vst [vmem:[%s4983_s8 + $0x90] sm:$0xff] %v3114_v63  ;;  %3225 = vst [vmem:[%s4983_s8 + $0x88] sm:$0xff] %v3073_v0  ;;  %v3118_v30 = vadd.f32 %v3117_v4, %v727_v27  ;;  %v3077_v62 = vadd.f32 %v3076_v57, %v723_v55  ;;  %v3119_v5 = vpop.f32.mrb[23].mxu0  ;;  %v3486_v55 = vpop.permute.xlu0 %3485 }
 0x332   :  { %3227 = vst [vmem:[%s4983_s8 + $0x98] sm:$0xff] %v3116_v3  ;;  %3248 = vst [vmem:[%s4983_s8 + $0x140] sm:$0x3] %v3075_v28  ;;  %v3120_v6 = vadd.f32 %v3119_v5, %v731_v56  ;;  %v3491_v46 = vpop.permute.xlu1 %3490 }
 0x333   :  { %3250 = vst [vmem:[%s4983_s8 + $0x150] sm:$0x3] %v3118_v30  ;;  %3249 = vst [vmem:[%s4983_s8 + $0x148] sm:$0x3] %v3077_v62 }
 0x334   :  { %3251 = vst [vmem:[%s4983_s8 + $0x158] sm:$0x3] %v3120_v6 }
 0x335   :  { %v3451_v0 = vpop.permute.xlu0 %3450 }
 0x336   :  { %v3476_v4 = vpop.permute.xlu1 %3475 }
 0x36d   :  { %v3156_v61 = vpop.f32.mrb[20].mxu1 }
 0x36e   :  { %v3157_v11 = vadd.f32 %v3156_v61, %v735_v7  ;;  %v3199_v12 = vpop.f32.mrb[24].mxu0  ;;  %v3158_v13 = vpop.f32.mrb[21].mxu1 }
 0x36f   :  { %v3200_v14 = vadd.f32 %v3199_v12, %v743_v8  ;;  %v3159_v15 = vadd.f32 %v3158_v13, %v739_v9  ;;  %v3201_v16 = vpop.f32.mrb[25].mxu0  ;;  %v3160_v17 = vpop.f32.mrb[22].mxu1 }
 0x370   :  { %3228 = vst [vmem:[%s4983_s8 + $0xa0] sm:$0xff] %v3157_v11  ;;  %v3202_v18 = vadd.f32 %v3201_v16, %v747_v10  ;;  %v3161_v37 = vadd.f32 %v3160_v17, %v735_v7  ;;  %v3203_v19 = vpop.f32.mrb[26].mxu0  ;;  %v3162_v38 = vpop.f32.mrb[23].mxu1 }
 0x371   :  { %3230 = vst [vmem:[%s4983_s8 + $0xb0] sm:$0xff] %v3200_v14  ;;  %3229 = vst [vmem:[%s4983_s8 + $0xa8] sm:$0xff] %v3159_v15  ;;  %v3204_v42 = vadd.f32 %v3203_v19, %v743_v8  ;;  %v3163_v43 = vadd.f32 %v3162_v38, %v739_v9  ;;  %v3205_v20 = vpop.f32.mrb[27].mxu0  ;;  %v3471_v7 = vpop.permute.xlu0 %3470 }
 0x372   :  { %3231 = vst [vmem:[%s4983_s8 + $0xb8] sm:$0xff] %v3202_v18  ;;  %3252 = vst [vmem:[%s4983_s8 + $0x160] sm:$0x3] %v3161_v37  ;;  %v3206_v21 = vadd.f32 %v3205_v20, %v747_v10 }
 0x373   :  { %3254 = vst [vmem:[%s4983_s8 + $0x170] sm:$0x3] %v3204_v42  ;;  %3253 = vst [vmem:[%s4983_s8 + $0x168] sm:$0x3] %v3163_v43 }
 0x374   :  { %3255 = vst [vmem:[%s4983_s8 + $0x178] sm:$0x3] %v3206_v21 }
 0x38d   :  { %v3394_v22 = vpop.f32.mrb[24].mxu1 }
 0x38e   :  { %v4229_v23 = vpop.f32.mrb[25].mxu1  ;;  %v4903_v60 = vmul.f32 %v3446_v53, %v3394_v22 }
 0x38f   :  { %v3397_v24 = vpop.f32.mrb[26].mxu1 }
 0x390   :  { %v4230_v25 = vpop.f32.mrb[27].mxu1  ;;  %v3503_v28 = vmul.f32 %v4903_v60, %v4903_v60  ;;  %v4911_v30 = vmul.f32 %v3451_v0, %v3397_v24 }
 0x392   :  { %v3504_v61 = vmul.f32 %v4911_v30, %v4911_v30 }
 0x395   :  { %v3402_v31 = vpop.f32.mrb[28].mxu1 }
 0x396   :  { %v4893_v50 = vmul.f32 %v3456_v29, %v3402_v31  ;;  %v4233_v32 = vpop.f32.mrb[29].mxu1 }
 0x397   :  { %v3405_v34 = vpop.f32.mrb[30].mxu1 }
 0x398   :  { %v3496_v35 = vmul.f32 %v3461_v33, %v3405_v34  ;;  %v4234_v36 = vpop.f32.mrb[31].mxu1  ;;  %v3505_v39 = vmul.f32 %v4893_v50, %v4893_v50 }
 0x39a   :  { %3517 = vadd.xlane.f32.xlu0 %v3505_v39  ;;  %v3506_v41 = vmul.f32 %v3496_v35, %v3496_v35 }
 0x39c   :  { %3519 = vadd.xlane.f32.xlu1 %v3506_v41 }
 0x39d   :  { %v3410_v44 = vpop.f32.mrb[32].mxu1 }
 0x39e   :  { %v4897_v45 = vmul.f32 %v3466_v40, %v3410_v44  ;;  %v4237_v47 = vpop.f32.mrb[33].mxu1 }
 0x39f   :  { %v3413_v49 = vpop.f32.mrb[34].mxu1 }
 0x3a0   :  { %v4238_v51 = vpop.f32.mrb[35].mxu1  ;;  %v3507_v52 = vmul.f32 %v4897_v45, %v4897_v45  ;;  %v4921_v10 = vmul.f32 %v3471_v7, %v3413_v49 }
 0x3a2   :  { %3521 = vadd.xlane.f32.xlu0 %v3507_v52  ;;  %v3508_v12 = vmul.f32 %v4921_v10, %v4921_v10 }
 0x3a5   :  { %v3418_v54 = vpop.f32.mrb[36].mxu1 }
 0x3a6   :  { %v4241_v27 = vpop.f32.mrb[37].mxu1  ;;  %v4917_v8 = vmul.f32 %v3476_v4, %v3418_v54 }
 0x3a7   :  { %v3421_v56 = vpop.f32.mrb[38].mxu1 }
 0x3a8   :  { %v4901_v58 = vmul.f32 %v3481_v48, %v3421_v56  ;;  %v4242_v59 = vpop.f32.mrb[39].mxu1  ;;  %v3509_v11 = vmul.f32 %v4917_v8, %v4917_v8 }
 0x3aa   :  { %v3510_v63 = vmul.f32 %v4901_v58, %v4901_v58 }
 0x3ac   :  { %3527 = vadd.xlane.f32.xlu0 %v3510_v63 }
 0x3ad   :  { %v3426_v1 = vpop.f32.mrb[40].mxu1 }
 0x3ae   :  { %v4907_v2 = vmul.f32 %v3486_v55, %v3426_v1  ;;  %v4245_v3 = vpop.f32.mrb[41].mxu1 }
 0x3af   :  { %v3429_v57 = vpop.f32.mrb[42].mxu1 }
 0x3b0   :  { %v4913_v62 = vmul.f32 %v3491_v46, %v3429_v57  ;;  %3513 = vadd.xlane.f32.xlu0 %v3503_v28  ;;  %v4246_v5 = vpop.f32.mrb[43].mxu1  ;;  %v3511_v6 = vmul.f32 %v4907_v2, %v4907_v2  ;;  %v3574_v46 = vand.u32 127, %v117_v26 }
 0x3b2   :  { %3529 = vadd.xlane.f32.xlu1 %v3511_v6  ;;  %v3512_v9 = vmul.f32 %v4913_v62, %v4913_v62  ;;  %vm3575_vm1 = vcmp.lt.s32.totalorder %v3574_v46, 18 }
 0x3b4   :  { %3531 = vadd.xlane.f32.xlu0 %v3512_v9 }
 0x3b6   :  { %3515 = vadd.xlane.f32.xlu1 %v3504_v61 }
 0x3b8   :  { %3525 = vadd.xlane.f32.xlu0 %v3509_v11 }
 0x3ba   :  { %3523 = vadd.xlane.f32.xlu1 %v3508_v12 }
 0x427   :  { %v3518_v13 = vpop.xlane.xlu0 %3517 }
 0x428   :  { %v3535_v14 = vmax.f32 %v3518_v13, 1e-24 }
 0x429   :  { %v3520_v15 = vpop.xlane.xlu1 %3519 }
 0x42a   :  { %4327 = vrsqrt.f32 %v3535_v14  ;;  %v3536_v16 = vmax.f32 %v3520_v15, 1e-24 }
 0x42c   :  { %4329 = vrsqrt.f32 %v3536_v16 }
 0x42f   :  { %v3522_v17 = vpop.xlane.xlu0 %3521 }
 0x430   :  { %v3537_v18 = vmax.f32 %v3522_v17, 1e-24 }
 0x432   :  { %4331 = vrsqrt.f32 %v3537_v18 }
 0x434   :  { %v4328_v37 = vpop.eup %4327 }
 0x435   :  { %v3555_v19 = vmul.f32 %v4328_v37, %v4893_v50 }
 0x436   :  { %v4330_v38 = vpop.eup %4329 }
 0x437   :  { %v3556_v42 = vmul.f32 %v4330_v38, %v3496_v35  ;;  %3565 = vst [vmem:[%s4984_s9 + $0x10] sm:$0xff] %v3555_v19 }
 0x439   :  { %v3528_v43 = vpop.xlane.xlu0 %3527  ;;  %3566 = vst [vmem:[%s4984_s9 + $0x18] sm:$0xff] %v3556_v42  ;;  %v4265_v20 = vpack.c.bf16 %v3556_v42, %v3555_v19 }
 0x43a   :  { %v3540_v21 = vmax.f32 %v3528_v43, 1e-24 }
 0x43b   :  { %4266 = vmatprep.subr.bf16.mxu0 %v4265_v20 }
 0x43c   :  { %v4332_v22 = vpop.eup %4331  ;;  %4333 = vrsqrt.f32 %v3540_v21  ;;  %4268 = vmatpush3.bf16.xpose.msra.mxu0 %v4265_v20 }
 0x43d   :  { %v3514_v23 = vpop.xlane.xlu0 %3513  ;;  %v3557_v24 = vmul.f32 %v4332_v22, %v4897_v45 }
 0x43e   :  { %v3533_v25 = vmax.f32 %v3514_v23, 1e-24 }
 0x43f   :  { %3567 = vst [vmem:[%s4984_s9 + $0x20] sm:$0xff] %v3557_v24  ;;  %4251 = vmatprep.subr.mxu0 %v3557_v24  ;;  %v3530_v29 = vpop.xlane.xlu1 %3529 }
 0x440   :  { %4335 = vrsqrt.f32 %v3533_v25  ;;  %v3541_v31 = vmax.f32 %v3530_v29, 1e-24 }
 0x441   :  { %v3532_v50 = vpop.xlane.xlu0 %3531 }
 0x442   :  { %4337 = vrsqrt.f32 %v3541_v31  ;;  %v3542_v32 = vmax.f32 %v3532_v50, 1e-24 }
 0x443   :  { %v3516_v33 = vpop.xlane.xlu1 %3515 }
 0x444   :  { %4339 = vrsqrt.f32 %v3542_v32  ;;  %v3534_v34 = vmax.f32 %v3516_v33, 1e-24  ;;  %4252 = vmatpush3.xpose.msra.mxu0 %v3557_v24 }
 0x445   :  { %v3526_v35 = vpop.xlane.xlu0 %3525 }
 0x446   :  { %v4334_v36 = vpop.eup %4333  ;;  %4341 = vrsqrt.f32 %v3534_v34  ;;  %v3539_v39 = vmax.f32 %v3526_v35, 1e-24 }
 0x447   :  { %v3524_v40 = vpop.xlane.xlu1 %3523  ;;  %v3560_v41 = vmul.f32 %v4334_v36, %v4901_v58 }
 0x448   :  { %4343 = vrsqrt.f32 %v3539_v39  ;;  %v3538_v44 = vmax.f32 %v3524_v40, 1e-24 }
 0x449   :  { %3570 = vst [vmem:[%s4984_s9 + $0x38] sm:$0xff] %v3560_v41 }
 0x44a   :  { %v4336_v45 = vpop.eup %4335  ;;  %4345 = vrsqrt.f32 %v3538_v44 }
 0x44b   :  { %v3553_v47 = vmul.f32 %v4336_v45, %v4903_v60 }
 0x44c   :  { %v4338_v48 = vpop.eup %4337 }
 0x44d   :  { %3563 = vst [vmem:[%s4984_s9] sm:$0xff] %v3553_v47  ;;  %4253 = vmatprep.mubr.f32.mxu0 %v3553_v47  ;;  %v3561_v49 = vmul.f32 %v4338_v48, %v4907_v2 }
 0x44e   :  { %v4340_v51 = vpop.eup %4339 }
 0x44f   :  { %3571 = vst [vmem:[%s4984_s9 + $0x40] sm:$0xff] %v3561_v49  ;;  %v4269_v52 = vpack.c.bf16 %v3561_v49, %v3560_v41  ;;  %v3562_v53 = vmul.f32 %v4340_v51, %v4913_v62 }
 0x450   :  { %v4342_v54 = vpop.eup %4341 }
 0x451   :  { %4270 = vmatprep.subr.bf16.mxu0 %v4269_v52  ;;  %v3554_v27 = vmul.f32 %v4342_v54, %v4911_v30  ;;  %3572 = vst [vmem:[%s4984_s9 + $0x48] sm:$0xff] %v3562_v53 }
 0x452   :  { %v4344_v55 = vpop.eup %4343 }
 0x453   :  { %3564 = vst [vmem:[%s4984_s9 + $0x8] sm:$0xff] %v3554_v27  ;;  %4254 = vmatmul.mubr.f32.vlgmr.msra.gmra.mrb[28].mxu0 %v3554_v27  ;;  %v3559_v56 = vmul.f32 %v4344_v55, %v4917_v8 }
 0x454   :  { %v4346_v58 = vpop.eup %4345  ;;  %4272 = vmatpush3.bf16.xpose.msra.mxu0 %v4269_v52 }
 0x455   :  { %4260 = vmatprep.subr.mxu0 %v3562_v53  ;;  %v3558_v59 = vmul.f32 %v4346_v58, %v4921_v10  ;;  %3569 = vst [vmem:[%s4984_s9 + $0x30] sm:$0xff] %v3559_v56 }
 0x457   :  { %3568 = vst [vmem:[%s4984_s9 + $0x28] sm:$0xff] %v3558_v59  ;;  %4262 = vmatprep.mubr.f32.mxu0 %v3558_v59 }
 0x45c   :  { %4261 = vmatpush3.xpose.msra.mxu0 %v3562_v53 }
 0x45f   :  { %4263 = vmatmul.mubr.f32.vlgmr.msra.gmra.mrb[30].mxu0 %v3559_v56 }
 0x526   :  { %v4255_v60 = vpop.f32.mrb[28].mxu0 }
 0x527   :  { %v3652_v63 = vsel %vm3575_vm1, %v4255_v60, -1e+30  ;;  %v3642_v0 = vpop.f32.mrb[29].mxu0 }
 0x528   :  { %v3651_v1 = vsel %vm3575_vm1, %v3642_v0, -1e+30  ;;  %v3657_v2 = vsel %vm3653_vm2, %v3652_v63, -inf }
 0x529   :  { %3658 = vmax.xlane.f32.xlu0 %v3657_v2  ;;  %v3654_v3 = vsel %vm3653_vm2, %v3651_v1, -inf }
 0x52a   :  { %3655 = vmax.xlane.f32.xlu1 %v3654_v3 }
 0x532   :  { %v4264_v28 = vpop.f32.mrb[30].mxu0 }
 0x533   :  { %v3744_v4 = vsel %vm3575_vm1, %v4264_v28, -1e+30  ;;  %v3734_v57 = vpop.f32.mrb[31].mxu0 }
 0x534   :  { %v3743_v30 = vsel %vm3575_vm1, %v3734_v57, -1e+30  ;;  %v3748_v62 = vsel %vm3653_vm2, %v3744_v4, -inf }
 0x535   :  { %3749 = vmax.xlane.f32.xlu0 %v3748_v62  ;;  %v3745_v5 = vsel %vm3653_vm2, %v3743_v30, -inf }
 0x536   :  { %3746 = vmax.xlane.f32.xlu1 %v3745_v5 }
 0x5b6   :  { %v3659_v6 = vpop.xlane.xlu0 %3658 }
 0x5b7   :  { %v3656_v26 = vpop.xlane.xlu1 %3655 }
 0x5b8   :  { %v3660_v7 = vadd.f32 %v3659_v6, %v3656_v26 }
 0x5ba   :  { %v3661_v8 = vrot.slane %v3660_v7, 4 }
 0x5bc   :  { %v3662_v9 = vadd.f32 %v3661_v8, %v3660_v7 }
 0x5be   :  { %v3663_v10 = vrot.slane %v3662_v9, 2 }
 0x5c0   :  { %v3664_v61 = vadd.f32 %v3663_v10, %v3662_v9 }
 0x5c2   :  { %v3665_v11 = vrot.slane %v3664_v61, 1  ;;  %v3750_v12 = vpop.xlane.xlu0 %3749 }
 0x5c3   :  { %v3747_v13 = vpop.xlane.xlu1 %3746 }
 0x5c4   :  { %v3666_v14 = vadd.f32 %v3665_v11, %v3664_v61  ;;  %v3751_v15 = vadd.f32 %v3750_v12, %v3747_v13 }
 0x5c6   :  { %3667 = vst [vmem:[%s4985_s10] sm:$0x1] %v3666_v14  ;;  %v3752_v16 = vrot.slane %v3751_v15, 4 }
 0x5c8   :  { %v3753_v17 = vadd.f32 %v3752_v16, %v3751_v15 }
 0x5ca   :  { %v3754_v18 = vrot.slane %v3753_v17, 2 }
 0x5cc   :  { %v3755_v37 = vadd.f32 %v3754_v18, %v3753_v17 }
 0x5ce   :  { %v3756_v19 = vrot.slane %v3755_v37, 1 }
 0x5d0   :  { %v3757_v38 = vadd.f32 %v3756_v19, %v3755_v37 }
 0x5d2   :  { %3758 = vst [vmem:[%s4985_s10 + $0x1] sm:$0x1] %v3757_v38 }
 0x5d3   :  { %3771 = vsyncpa [#allocation3], 1 }
 0x5d4   :  { %3772 = vsyncpa [#allocation5], 1 }
 0x5d5   :  { %3773 = vsyncpa [#allocation8], 1 }

</bundles_post_ra>
